<compile_context>
chip_gen: v7x
topology: tpu7x:2x2x1
jax: 0.10.0
libtpu: 0.0.40
codegen_flags: <defaults>
</compile_context>

<pallas_src>
import jax
import jax.numpy as jnp
from jax.experimental import pallas as pl
from jax.experimental.pallas import tpu as pltpu

# ----- "config" (OlmoeConfig-like, small demo sizes) -----
HIDDEN = 128            # config.hidden_size
INTERMEDIATE = 256      # config.intermediate_size (OlmoeMLP)
N_EXPERTS = 8           # config.num_experts
TOP_K = 2               # config.num_experts_per_tok
NORM_TOPK_PROB = True   # config.norm_topk_prob

EI = N_EXPERTS * INTERMEDIATE      # 2048 — fused down-GEMM contraction dim
LOGIT_LANES = 128                  # lane-dense router_logits output width
NEG = -1e30


def _round_up(n, m):
    return ((n + m - 1) // m) * m


def moe_kernel(x_ref, gp_ref, wgu_ref, wd_ref, out_ref, logits_ref):
    tm = x_ref.shape[0]

    x = x_ref[...]                                            # (tm, H) f32

    # --- router logits: f32 matmul against the zero-padded gate weight ---
    # lane-dense (tm, 128) result -> unmasked vst; cols >= N_EXPERTS are zero.
    logits = jnp.dot(x, gp_ref[...], preferred_element_type=jnp.float32)
    logits_ref[...] = logits

    # --- softmax over the real experts (padded lanes masked off), f32 ---
    lane = jax.lax.broadcasted_iota(jnp.int32, (tm, LOGIT_LANES), 1)
    lg = jnp.where(lane < N_EXPERTS, logits, NEG)
    m = jnp.max(lg, axis=-1, keepdims=True)
    p = jnp.exp(lg - m)                                       # padded lanes -> 0
    probs = p * pl.reciprocal(jnp.sum(p, axis=-1, keepdims=True), approx=True)

    # --- top-k -> dense per-expert routing weights (zeros for unselected) ---
    w_dense = jnp.zeros((tm, LOGIT_LANES), jnp.float32)
    work = probs
    for _ in range(TOP_K):
        mj = jnp.max(work, axis=-1, keepdims=True)
        amj = jnp.min(jnp.where(work == mj, lane, LOGIT_LANES),
                      axis=-1, keepdims=True)
        sel = lane == amj
        w_dense = jnp.where(sel, probs, w_dense)
        work = jnp.where(sel, -1.0, work)
    if NORM_TOPK_PROB:
        w_dense = w_dense * pl.reciprocal(
            jnp.sum(w_dense, axis=-1, keepdims=True), approx=True)

    # --- fused expert compute: bf16 MXU operands, f32 accumulation ---
    xb = x.astype(jnp.bfloat16)
    # one GEMM for all gate + up projections: (tm, H) @ (H, 2*E*I)
    gu = jnp.dot(xb, wgu_ref[...], preferred_element_type=jnp.float32)
    g_all = gu[:, :EI]                                        # (tm, E*I)
    u_all = gu[:, EI:]                                        # (tm, E*I)
    h_all = (g_all * jax.nn.sigmoid(g_all)) * u_all           # SiLU*up, f32 VPU/EUP

    # fold routing weight into h per expert, lay experts along lanes
    pieces = []
    for e in range(N_EXPERTS):
        w_col = w_dense[:, e:e + 1]                           # (tm, 1)
        h_e = h_all[:, e * INTERMEDIATE:(e + 1) * INTERMEDIATE] * w_col
        pieces.append(h_e.astype(jnp.bfloat16))
    hw = jnp.concatenate(pieces, axis=1)                      # (tm, E*I) bf16

    # one GEMM for all down projections + expert accumulation: K = E*I
    out = jnp.dot(hw, wd_ref[...], preferred_element_type=jnp.float32)
    out_ref[...] = out.astype(out_ref.dtype)


def olmoe_sparse_moe_block(hidden_states, gate_w, wg, wu, wd, *, tm=256):
    """hidden_states: (B, S, H). gate_w: (E, H) (torch Linear layout).
    wg, wu: (E, H, I) (pre-transposed so kernel does x @ wg[e]); wd: (E, I, H).
    Returns (final_hidden_states (B, S, H), router_logits (T, E))."""
    B, S, H = hidden_states.shape
    assert H == HIDDEN and gate_w.shape == (N_EXPERTS, HIDDEN)
    x = hidden_states.reshape(-1, H).astype(jnp.float32)
    T = x.shape[0]

    # token tile: multiple of 8, big enough to amortize grid-step overhead
    # (sweep 256 -> 512 -> 1024 at production T), but keep >= 2 tiles once
    # there is enough work so both v7x TensorCores get a share.
    tm = min(tm, _round_up(T, 8))
    if T >= 256:
        tm = min(tm, _round_up((T + 1) // 2, 128))
    tm = max(tm, 8)
    T_pad = _round_up(T, tm)
    if T_pad != T:
        x = jnp.pad(x, ((0, T_pad - T), (0, 0)))   # zero rows -> zero outputs

    # weight prep (wrapper, once): fused gate|up matrix (H, 2*E*I) and fused
    # down matrix (E*I, H) in bf16; router gate stays f32, lane-padded to 128.
    wgu = jnp.concatenate(
        [jnp.transpose(wg, (1, 0, 2)).reshape(H, EI),
         jnp.transpose(wu, (1, 0, 2)).reshape(H, EI)],
        axis=1).astype(jnp.bfloat16)                          # (H, 2*E*I)
    wd2 = wd.reshape(EI, H).astype(jnp.bfloat16)              # (E*I, H)
    gate_pad = jnp.zeros((H, LOGIT_LANES), jnp.float32).at[:, :N_EXPERTS].set(
        jnp.transpose(gate_w).astype(jnp.float32))            # (H, 128)

    out_shape = (jax.ShapeDtypeStruct((T_pad, H), hidden_states.dtype),
                 jax.ShapeDtypeStruct((T_pad, LOGIT_LANES), jnp.float32))

    # TODO(synk): constant-index weight specs could use pipeline_mode=
    # pl.Buffered(1) to drop the redundant second buffer on v5e; kept default
    # buffering here for maximum compile compatibility (VMEM budget is ample).
    final, logits = pl.pallas_call(
        moe_kernel,
        out_shape=out_shape,
        grid_spec=pltpu.PrefetchScalarGridSpec(
            num_scalar_prefetch=0,
            grid=(T_pad // tm,),
            in_specs=[
                pl.BlockSpec((tm, H), lambda i: (i, 0)),
                pl.BlockSpec((H, LOGIT_LANES), lambda i: (0, 0)),
                pl.BlockSpec((H, 2 * EI), lambda i: (0, 0)),
                pl.BlockSpec((EI, H), lambda i: (0, 0)),
            ],
            out_specs=[
                pl.BlockSpec((tm, H), lambda i: (i, 0)),
                pl.BlockSpec((tm, LOGIT_LANES), lambda i: (i, 0)),
            ]),
        compiler_params=pltpu.CompilerParams(
            dimension_semantics=("parallel",),   # no carry -> megacore-safe
            vmem_limit_bytes=48 * 1024 * 1024),
    )(x, gate_pad, wgu, wd2)

    final = final[:T].reshape(B, S, H).astype(hidden_states.dtype)
    return final, logits[:T, :N_EXPERTS]


def reference(hidden_states, gate_w, wg, wu, wd):
    """Pure-JAX (f32) mirror of the torch forward, for verification."""
    B, S, H = hidden_states.shape
    x = hidden_states.reshape(-1, H).astype(jnp.float32)
    logits = x @ gate_w.T.astype(jnp.float32)
    probs = jax.nn.softmax(logits, axis=-1)
    vals, idx = jax.lax.top_k(probs, TOP_K)
    if NORM_TOPK_PROB:
        vals = vals / vals.sum(-1, keepdims=True)
    T = x.shape[0]
    w_dense = jnp.zeros((T, N_EXPERTS), jnp.float32).at[
        jnp.arange(T)[:, None], idx].set(vals)
    out = jnp.zeros((T, H), jnp.float32)
    for e_i in range(N_EXPERTS):
        g = x @ wg[e_i]
        u = x @ wu[e_i]
        h = (g * jax.nn.sigmoid(g)) * u
        out = out + w_dense[:, e_i:e_i + 1] * (h @ wd[e_i])
    return out.reshape(B, S, H), logits


if __name__ == "__main__":
    key = jax.random.PRNGKey(0)
    k0, k1, k2, k3, k4 = jax.random.split(key, 5)

    batch, seq = 2, 8                      # T = 16 tokens
    hidden_states = jax.random.normal(k0, (batch, seq, HIDDEN), jnp.float32)
    gate_w = jax.random.normal(k1, (N_EXPERTS, HIDDEN), jnp.float32) / (HIDDEN ** 0.5)
    wg = jax.random.normal(k2, (N_EXPERTS, HIDDEN, INTERMEDIATE), jnp.float32) / (HIDDEN ** 0.5)
    wu = jax.random.normal(k3, (N_EXPERTS, HIDDEN, INTERMEDIATE), jnp.float32) / (HIDDEN ** 0.5)
    wd = jax.random.normal(k4, (N_EXPERTS, INTERMEDIATE, HIDDEN), jnp.float32) / (INTERMEDIATE ** 0.5)

    out, router_logits = olmoe_sparse_moe_block(hidden_states, gate_w, wg, wu, wd)
    jax.block_until_ready((out, router_logits))

    ref_out, ref_logits = reference(hidden_states, gate_w, wg, wu, wd)
    # router logits are computed in f32 in both paths -> tight tolerance
    assert jnp.allclose(router_logits, ref_logits, atol=1e-4, rtol=1e-4), "logits mismatch"
    # expert path uses bf16 MXU operands with f32 accumulation -> looser tolerance
    assert jnp.allclose(out, ref_out, atol=5e-2, rtol=5e-2), "output mismatch"

    # TODO(synk): torch computes only the tokens routed to each expert
    # (torch.where + index_add_); here the routing weight (zero for unselected
    # experts) is folded into h before a single fused down GEMM — identical
    # result, but dense FLOPs. A megablocks-style scalar-prefetched token
    # permutation would recover the TOP_K/E (=4x) FLOP reduction.
    print("KERNEL_OK")
</pallas_src>

<mosaic_0001>
module attributes {stable_mosaic.version = 11 : i64} {
  func.func @moe_kernel(%arg0: i32, %arg1: memref<16x128xf32, #tpu.memory_space<vmem>>, %arg2: memref<128x128xf32, #tpu.memory_space<vmem>>, %arg3: memref<128x4096xbf16, #tpu.memory_space<vmem>>, %arg4: memref<2048x128xbf16, #tpu.memory_space<vmem>>, %arg5: memref<16x128xf32, #tpu.memory_space<vmem>>, %arg6: memref<16x128xf32, #tpu.memory_space<vmem>>) attributes {dimension_semantics = [#tpu.dimension_semantics<parallel>], iteration_bounds = array<i64: 1>, scalar_prefetch = 0 : i64, scratch_operands = 0 : i64, tpu.core_type = #tpu.core_type<tc>, window_params = [{transform_indices = @transform_0, window_bounds = array<i64: 16, 128>}, {pipeline_mode = #tpu.pipeline_mode<synchronous>, transform_indices = @transform_1, window_bounds = array<i64: 128, 128>}, {pipeline_mode = #tpu.pipeline_mode<synchronous>, transform_indices = @transform_2, window_bounds = array<i64: 128, 4096>}, {pipeline_mode = #tpu.pipeline_mode<synchronous>, transform_indices = @transform_3, window_bounds = array<i64: 2048, 128>}, {transform_indices = @transform_4, window_bounds = array<i64: 16, 128>}, {transform_indices = @transform_5, window_bounds = array<i64: 16, 128>}]} {
    %c0 = arith.constant 0 : index
    %c0_0 = arith.constant 0 : index
    %0 = vector.load %arg1[%c0, %c0_0] : memref<16x128xf32, #tpu.memory_space<vmem>>, vector<16x128xf32>
    %c0_1 = arith.constant 0 : index
    %c0_2 = arith.constant 0 : index
    %1 = vector.load %arg2[%c0_1, %c0_2] : memref<128x128xf32, #tpu.memory_space<vmem>>, vector<128x128xf32>
    %cst = arith.constant dense<0.000000e+00> : vector<16x128xf32>
    %2 = tpu.matmul %0, %1, %cst {dimension_numbers = #tpu.dot_dimension_numbers<[1], [0], [0], [1], [0, 0, 1, 1], [], []>} : vector<16x128xf32>, vector<128x128xf32>, vector<16x128xf32> -> vector<16x128xf32>
    %c0_3 = arith.constant 0 : index
    %c0_4 = arith.constant 0 : index
    %3 = vector.load %arg6[%c0_3, %c0_4] : memref<16x128xf32, #tpu.memory_space<vmem>>, vector<16x128xf32>
    tpu.vector_store %arg6[%c0_3, %c0_4], %2 {strides = array<i32>} : memref<16x128xf32, #tpu.memory_space<vmem>>, vector<16x128xf32>,
    %4 = tpu.iota {dimensions = array<i32: 1>} : vector<16x128xi32>
    %c8_i32 = arith.constant 8 : i32
    %5 = vector.broadcast %c8_i32 : i32 to vector<16x128xi32>
    %6 = arith.cmpi slt, %4, %5 : vector<16x128xi32>
    %cst_5 = arith.constant -1.000000e+30 : f32
    %7 = vector.broadcast %cst_5 : f32 to vector<16x128xf32>
    %8 = arith.select %6, %2, %7 : vector<16x128xi1>, vector<16x128xf32>
    %cst_6 = arith.constant dense<0xFF800000> : vector<16xf32>
    %9 = vector.multi_reduction <maximumf>, %8, %cst_6 [1] : vector<16x128xf32> to vector<16xf32>
    %10 = vector.shape_cast %9 : vector<16xf32> to vector<16x1xf32>
    %11 = vector.broadcast %10 : vector<16x1xf32> to vector<16x128xf32>
    %12 = arith.subf %8, %11 : vector<16x128xf32>
    %13 = math.exp %12 : vector<16x128xf32>
    %cst_7 = arith.constant dense<0.000000e+00> : vector<16xf32>
    %14 = vector.multi_reduction <add>, %13, %cst_7 [1] : vector<16x128xf32> to vector<16xf32>
    %15 = vector.shape_cast %14 : vector<16xf32> to vector<16x1xf32>
    %16 = tpu.reciprocal %15 {approx = true} : vector<16x1xf32> -> vector<16x1xf32>
    %17 = vector.broadcast %16 : vector<16x1xf32> to vector<16x128xf32>
    %18 = arith.mulf %13, %17 : vector<16x128xf32>
    %cst_8 = arith.constant 0.000000e+00 : f32
    %19 = vector.broadcast %cst_8 : f32 to vector<16x128xf32>
    %cst_9 = arith.constant dense<0xFF800000> : vector<16xf32>
    %20 = vector.multi_reduction <maximumf>, %18, %cst_9 [1] : vector<16x128xf32> to vector<16xf32>
    %21 = vector.shape_cast %20 : vector<16xf32> to vector<16x1xf32>
    %22 = vector.broadcast %21 : vector<16x1xf32> to vector<16x128xf32>
    %23 = arith.cmpf oeq, %18, %22 : vector<16x128xf32>
    %c128_i32 = arith.constant 128 : i32
    %24 = vector.broadcast %c128_i32 : i32 to vector<16x128xi32>
    %25 = arith.select %23, %4, %24 : vector<16x128xi1>, vector<16x128xi32>
    %cst_10 = arith.constant dense<2147483647> : vector<16xi32>
    %26 = vector.multi_reduction <minsi>, %25, %cst_10 [1] : vector<16x128xi32> to vector<16xi32>
    %27 = vector.shape_cast %26 : vector<16xi32> to vector<16x1xi32>
    %28 = vector.broadcast %27 : vector<16x1xi32> to vector<16x128xi32>
    %29 = arith.cmpi eq, %4, %28 : vector<16x128xi32>
    %30 = arith.select %29, %18, %19 : vector<16x128xi1>, vector<16x128xf32>
    %cst_11 = arith.constant -1.000000e+00 : f32
    %31 = vector.broadcast %cst_11 : f32 to vector<16x128xf32>
    %32 = arith.select %29, %31, %18 : vector<16x128xi1>, vector<16x128xf32>
    %cst_12 = arith.constant dense<0xFF800000> : vector<16xf32>
    %33 = vector.multi_reduction <maximumf>, %32, %cst_12 [1] : vector<16x128xf32> to vector<16xf32>
    %34 = vector.shape_cast %33 : vector<16xf32> to vector<16x1xf32>
    %35 = vector.broadcast %34 : vector<16x1xf32> to vector<16x128xf32>
    %36 = arith.cmpf oeq, %32, %35 : vector<16x128xf32>
    %c128_i32_13 = arith.constant 128 : i32
    %37 = vector.broadcast %c128_i32_13 : i32 to vector<16x128xi32>
    %38 = arith.select %36, %4, %37 : vector<16x128xi1>, vector<16x128xi32>
    %cst_14 = arith.constant dense<2147483647> : vector<16xi32>
    %39 = vector.multi_reduction <minsi>, %38, %cst_14 [1] : vector<16x128xi32> to vector<16xi32>
    %40 = vector.shape_cast %39 : vector<16xi32> to vector<16x1xi32>
    %41 = vector.broadcast %40 : vector<16x1xi32> to vector<16x128xi32>
    %42 = arith.cmpi eq, %4, %41 : vector<16x128xi32>
    %43 = arith.select %42, %18, %30 : vector<16x128xi1>, vector<16x128xf32>
    %cst_15 = arith.constant dense<0.000000e+00> : vector<16xf32>
    %44 = vector.multi_reduction <add>, %43, %cst_15 [1] : vector<16x128xf32> to vector<16xf32>
    %45 = vector.shape_cast %44 : vector<16xf32> to vector<16x1xf32>
    %46 = tpu.reciprocal %45 {approx = true} : vector<16x1xf32> -> vector<16x1xf32>
    %47 = vector.broadcast %46 : vector<16x1xf32> to vector<16x128xf32>
    %48 = arith.mulf %43, %47 : vector<16x128xf32>
    %49 = arith.truncf %0 : vector<16x128xf32> to vector<16x128xbf16>
    %c0_16 = arith.constant 0 : index
    %c0_17 = arith.constant 0 : index
    %50 = vector.load %arg3[%c0_16, %c0_17] : memref<128x4096xbf16, #tpu.memory_space<vmem>>, vector<128x4096xbf16>
    %cst_18 = arith.constant dense<0.000000e+00> : vector<16x4096xf32>
    %51 = tpu.matmul %49, %50, %cst_18 {dimension_numbers = #tpu.dot_dimension_numbers<[1], [0], [0], [1], [0, 0, 1, 1], [], []>} : vector<16x128xbf16>, vector<128x4096xbf16>, vector<16x4096xf32> -> vector<16x4096xf32>
    %52 = vector.extract_strided_slice %51 {offsets = [0, 0], sizes = [16, 2048], strides = [1, 1]} : vector<16x4096xf32> to vector<16x2048xf32>
    %53 = vector.extract_strided_slice %51 {offsets = [0, 2048], sizes = [16, 2048], strides = [1, 1]} : vector<16x4096xf32> to vector<16x2048xf32>
    %54 = arith.negf %52 : vector<16x2048xf32>
    %55 = math.exp %54 : vector<16x2048xf32>
    %cst_19 = arith.constant 1.000000e+00 : f32
    %56 = vector.broadcast %cst_19 : f32 to vector<16x2048xf32>
    %57 = arith.addf %56, %55 : vector<16x2048xf32>
    %58 = arith.divf %56, %57 : vector<16x2048xf32>
    %59 = arith.mulf %52, %58 : vector<16x2048xf32>
    %60 = arith.mulf %59, %53 : vector<16x2048xf32>
    %61 = vector.extract_strided_slice %48 {offsets = [0, 0], sizes = [16, 1], strides = [1, 1]} : vector<16x128xf32> to vector<16x1xf32>
    %62 = vector.extract_strided_slice %60 {offsets = [0, 0], sizes = [16, 256], strides = [1, 1]} : vector<16x2048xf32> to vector<16x256xf32>
    %63 = vector.broadcast %61 : vector<16x1xf32> to vector<16x256xf32>
    %64 = arith.mulf %62, %63 : vector<16x256xf32>
    %65 = arith.truncf %64 : vector<16x256xf32> to vector<16x256xbf16>
    %66 = vector.extract_strided_slice %48 {offsets = [0, 1], sizes = [16, 1], strides = [1, 1]} : vector<16x128xf32> to vector<16x1xf32>
    %67 = vector.extract_strided_slice %60 {offsets = [0, 256], sizes = [16, 256], strides = [1, 1]} : vector<16x2048xf32> to vector<16x256xf32>
    %68 = vector.broadcast %66 : vector<16x1xf32> to vector<16x256xf32>
    %69 = arith.mulf %67, %68 : vector<16x256xf32>
    %70 = arith.truncf %69 : vector<16x256xf32> to vector<16x256xbf16>
    %71 = vector.extract_strided_slice %48 {offsets = [0, 2], sizes = [16, 1], strides = [1, 1]} : vector<16x128xf32> to vector<16x1xf32>
    %72 = vector.extract_strided_slice %60 {offsets = [0, 512], sizes = [16, 256], strides = [1, 1]} : vector<16x2048xf32> to vector<16x256xf32>
    %73 = vector.broadcast %71 : vector<16x1xf32> to vector<16x256xf32>
    %74 = arith.mulf %72, %73 : vector<16x256xf32>
    %75 = arith.truncf %74 : vector<16x256xf32> to vector<16x256xbf16>
    %76 = vector.extract_strided_slice %48 {offsets = [0, 3], sizes = [16, 1], strides = [1, 1]} : vector<16x128xf32> to vector<16x1xf32>
    %77 = vector.extract_strided_slice %60 {offsets = [0, 768], sizes = [16, 256], strides = [1, 1]} : vector<16x2048xf32> to vector<16x256xf32>
    %78 = vector.broadcast %76 : vector<16x1xf32> to vector<16x256xf32>
    %79 = arith.mulf %77, %78 : vector<16x256xf32>
    %80 = arith.truncf %79 : vector<16x256xf32> to vector<16x256xbf16>
    %81 = vector.extract_strided_slice %48 {offsets = [0, 4], sizes = [16, 1], strides = [1, 1]} : vector<16x128xf32> to vector<16x1xf32>
    %82 = vector.extract_strided_slice %60 {offsets = [0, 1024], sizes = [16, 256], strides = [1, 1]} : vector<16x2048xf32> to vector<16x256xf32>
    %83 = vector.broadcast %81 : vector<16x1xf32> to vector<16x256xf32>
    %84 = arith.mulf %82, %83 : vector<16x256xf32>
    %85 = arith.truncf %84 : vector<16x256xf32> to vector<16x256xbf16>
    %86 = vector.extract_strided_slice %48 {offsets = [0, 5], sizes = [16, 1], strides = [1, 1]} : vector<16x128xf32> to vector<16x1xf32>
    %87 = vector.extract_strided_slice %60 {offsets = [0, 1280], sizes = [16, 256], strides = [1, 1]} : vector<16x2048xf32> to vector<16x256xf32>
    %88 = vector.broadcast %86 : vector<16x1xf32> to vector<16x256xf32>
    %89 = arith.mulf %87, %88 : vector<16x256xf32>
    %90 = arith.truncf %89 : vector<16x256xf32> to vector<16x256xbf16>
    %91 = vector.extract_strided_slice %48 {offsets = [0, 6], sizes = [16, 1], strides = [1, 1]} : vector<16x128xf32> to vector<16x1xf32>
    %92 = vector.extract_strided_slice %60 {offsets = [0, 1536], sizes = [16, 256], strides = [1, 1]} : vector<16x2048xf32> to vector<16x256xf32>
    %93 = vector.broadcast %91 : vector<16x1xf32> to vector<16x256xf32>
    %94 = arith.mulf %92, %93 : vector<16x256xf32>
    %95 = arith.truncf %94 : vector<16x256xf32> to vector<16x256xbf16>
    %96 = vector.extract_strided_slice %48 {offsets = [0, 7], sizes = [16, 1], strides = [1, 1]} : vector<16x128xf32> to vector<16x1xf32>
    %97 = vector.extract_strided_slice %60 {offsets = [0, 1792], sizes = [16, 256], strides = [1, 1]} : vector<16x2048xf32> to vector<16x256xf32>
    %98 = vector.broadcast %96 : vector<16x1xf32> to vector<16x256xf32>
    %99 = arith.mulf %97, %98 : vector<16x256xf32>
    %100 = arith.truncf %99 : vector<16x256xf32> to vector<16x256xbf16>
    %101 = tpu.concatenate %65, %70, %75, %80, %85, %90, %95, %100 in 1 : vector<16x256xbf16>, vector<16x256xbf16>, vector<16x256xbf16>, vector<16x256xbf16>, vector<16x256xbf16>, vector<16x256xbf16>, vector<16x256xbf16>, vector<16x256xbf16> -> vector<16x2048xbf16>
    %c0_20 = arith.constant 0 : index
    %c0_21 = arith.constant 0 : index
    %102 = vector.load %arg4[%c0_20, %c0_21] : memref<2048x128xbf16, #tpu.memory_space<vmem>>, vector<2048x128xbf16>
    %cst_22 = arith.constant dense<0.000000e+00> : vector<16x128xf32>
    %103 = tpu.matmul %101, %102, %cst_22 {dimension_numbers = #tpu.dot_dimension_numbers<[1], [0], [0], [1], [0, 0, 1, 1], [], []>} : vector<16x2048xbf16>, vector<2048x128xbf16>, vector<16x128xf32> -> vector<16x128xf32>
    %c0_23 = arith.constant 0 : index
    %c0_24 = arith.constant 0 : index
    %104 = vector.load %arg5[%c0_23, %c0_24] : memref<16x128xf32, #tpu.memory_space<vmem>>, vector<16x128xf32>
    tpu.vector_store %arg5[%c0_23, %c0_24], %103 {strides = array<i32>} : memref<16x128xf32, #tpu.memory_space<vmem>>, vector<16x128xf32>,
    return
  }
  func.func @transform_0(%arg0: i32) -> (i32, i32) {
    %c0_i32 = arith.constant 0 : i32
    %c0_i32_0 = arith.constant 0 : i32
    return %arg0, %c0_i32 : i32, i32
  }
  func.func @transform_1(%arg0: i32) -> (i32, i32) {
    %c0_i32 = arith.constant 0 : i32
    %c0_i32_0 = arith.constant 0 : i32
    %c0_i32_1 = arith.constant 0 : i32
    return %c0_i32, %c0_i32_0 : i32, i32
  }
  func.func @transform_2(%arg0: i32) -> (i32, i32) {
    %c0_i32 = arith.constant 0 : i32
    %c0_i32_0 = arith.constant 0 : i32
    %c0_i32_1 = arith.constant 0 : i32
    return %c0_i32, %c0_i32_0 : i32, i32
  }
  func.func @transform_3(%arg0: i32) -> (i32, i32) {
    %c0_i32 = arith.constant 0 : i32
    %c0_i32_0 = arith.constant 0 : i32
    %c0_i32_1 = arith.constant 0 : i32
    return %c0_i32, %c0_i32_0 : i32, i32
  }
  func.func @transform_4(%arg0: i32) -> (i32, i32) {
    %c0_i32 = arith.constant 0 : i32
    %c0_i32_0 = arith.constant 0 : i32
    return %arg0, %c0_i32 : i32, i32
  }
  func.func @transform_5(%arg0: i32) -> (i32, i32) {
    %c0_i32 = arith.constant 0 : i32
    %c0_i32_0 = arith.constant 0 : i32
    return %arg0, %c0_i32 : i32, i32
  }
}

</mosaic_0001>

<bundles_post_ra>
// kernel: tpu_custom_call.1
= control target key start
LH: loop header
LB: loop body
LE: loop exit
PB: predicated region body
PF: predicated region fallthrough
CT: control target
= control target key end

     0   :  { %11 = vsyncpa [#allocation3], 0  ;;  %s5925_s0 = inlined_call_operand.hbm [shape: f32[16,128], index: 0, kind: input, shape index: {}]   ;;  %s5926_s1 = inlined_call_operand.hbm [shape: f32[128,128], index: 1, kind: input, shape index: {}]   ;;  %s5927_s2 = inlined_call_operand.hbm [shape: bf16[128,4096], index: 2, kind: input, shape index: {}]   ;;  %s5928_s3 = inlined_call_operand.hbm [shape: bf16[2048,128], index: 3, kind: input, shape index: {}]   ;;  %s5929_s4 = inlined_call_operand.hbm [shape: f32[16,128], index: 4, kind: output, shape index: {0}]   ;;  %s5930_s5 = inlined_call_operand.hbm [shape: f32[16,128], index: 5, kind: output, shape index: {1}]  }
   0x1   :  { %12 = vsyncpa [#allocation6], 0 }
   0x2   :  { %13 = vsyncpa [#allocation9], 0 }
   0x3   :  { %14 = vsyncpa [#allocation4], 0 }
   0x4   :  { %15 = vsyncpa [#allocation12], 0  ;;  %s5387_s18 = smov [#allocation5]   ;;  %s5388_s20 = smov [#allocation2]  }
   0x5   :  { %s33_s19 = sshll.u32 %s5387_s18, 4  ;;  %s21_s21 = sshll.u32 %s5388_s20, 4  ;;  %s34_s19 = int_to_ptr.vmem [resolvable:$true] %s33_s19  ;;  %s5436_s21 = int_to_ptr.vmem [resolvable:$true] %s21_s21 }
   0x6   :  { %s5245_s24 = scalar_lea.hbm %s5926_s1, 2048 }
   0x7   :  { %p5246_p0 = scmp.ne.s32.totalorder %s5926_s1, %s5245_s24  ;;  %p5249_p1 = scmp.lt.u32.totalorder %s5245_s24, %s5926_s1 }
   0x9   :  { %p5251_p2 = pnand %p5249_p1, %p5246_p0 }
   0xb   :  { %5254 = shalt.err (!%p5251_p2)
}
   0xc   :  { %s5255_s29 = scalar_lea.vmem %s34_s19, 2048  ;;  %p5260_p4 = scmp.lt.s32.totalorder %s34_s19, %s34_s19 }
   0xd   :  { %p5256_p3 = scmp.ne.s32.totalorder %s34_s19, %s5255_s29  ;;  %p5261_p5 = scmp.lt.s32.totalorder %s5255_s29, %s5255_s29 }
   0xf   :  { %p5262_p6 = por %p5261_p5, %p5260_p4 }
  0x11   :  { %p5263_p7 = pnand %p5262_p6, %p5256_p3 }
  0x13   :  { %5266 = shalt.err (!%p5263_p7)
}
  0x14   :  { %s5389_s30 = smov 128   ;;  %s5390_s6 = smov 8  }
  0x15   :  { %39 = dma.hbm_to_vmem [thread:$0]  %s5926_s1, 2048, %s34_s19, [#allocation6], %s5389_s30, %s5389_s30, %s5390_s6  }
  0x16   :  { %s5267_s11 = scalar_lea.hbm %s5925_s0, 256 }
  0x17   :  { %p5268_p8 = scmp.ne.s32.totalorder %s5925_s0, %s5267_s11  ;;  %p5271_p9 = scmp.lt.u32.totalorder %s5267_s11, %s5925_s0 }
  0x19   :  { %p5273_p10 = pnand %p5271_p9, %p5268_p8 }
  0x1b   :  { %5276 = shalt.err (!%p5273_p10)
}
  0x1c   :  { %s5277_s16 = scalar_lea.vmem %s5436_s21, 256  ;;  %p5282_p12 = scmp.lt.s32.totalorder %s5436_s21, %s5436_s21 }
  0x1d   :  { %p5278_p11 = scmp.ne.s32.totalorder %s5436_s21, %s5277_s16  ;;  %p5283_p13 = scmp.lt.s32.totalorder %s5277_s16, %s5277_s16 }
  0x1f   :  { %p5284_p0 = por %p5283_p13, %p5282_p12 }
  0x21   :  { %p5285_p1 = pnand %p5284_p0, %p5278_p11 }
  0x23   :  { %5288 = shalt.err (!%p5285_p1)
}
  0x24   :  { %27 = dma.hbm_to_vmem [thread:$0]  %s5925_s0, 256, %s5436_s21, [#allocation3], %s5389_s30, %s5389_s30, %s5390_s6  }
  0x25   :  { %s5391_s18 = smov [#allocation7]   ;;  %s5392_s20 = smov [#allocation8]  }
  0x26   :  { %s45_s19 = sshll.u32 %s5391_s18, 4  ;;  %s57_s22 = sshll.u32 %s5392_s20, 4  ;;  %s46_s19 = int_to_ptr.vmem [resolvable:$true] %s45_s19  ;;  %s58_s22 = int_to_ptr.vmem [resolvable:$true] %s57_s22 }
  0x27   :  { %s5289_s25 = scalar_lea.hbm %s5927_s2, 32768 }
  0x28   :  { %p5290_p2 = scmp.ne.s32.totalorder %s5927_s2, %s5289_s25  ;;  %p5293_p3 = scmp.lt.u32.totalorder %s5289_s25, %s5927_s2 }
  0x2a   :  { %p5295_p4 = pnand %p5293_p3, %p5290_p2 }
  0x2c   :  { %5298 = shalt.err (!%p5295_p4)
}
  0x2d   :  { %s5299_s0 = scalar_lea.vmem %s46_s19, 32768  ;;  %p5304_p6 = scmp.lt.s32.totalorder %s46_s19, %s46_s19 }
  0x2e   :  { %p5300_p5 = scmp.ne.s32.totalorder %s46_s19, %s5299_s0  ;;  %p5305_p7 = scmp.lt.s32.totalorder %s5299_s0, %s5299_s0 }
  0x30   :  { %p5306_p8 = por %p5305_p7, %p5304_p6 }
  0x32   :  { %p5307_p9 = pnand %p5306_p8, %p5300_p5 }
  0x34   :  { %5310 = shalt.err (!%p5307_p9)
}
  0x35   :  { %s5393_s21 = smov 2048   ;;  %s5311_s11 = scalar_lea.hbm %s5928_s3, 16384 }
  0x36   :  { %51 = dma.hbm_to_vmem [thread:$0]  %s5927_s2, 32768, %s46_s19, [#allocation6], %s5393_s21, %s5393_s21, %s5389_s30  }
  0x37   :  { %p5312_p10 = scmp.ne.s32.totalorder %s5928_s3, %s5311_s11  ;;  %p5315_p11 = scmp.lt.u32.totalorder %s5311_s11, %s5928_s3 }
  0x39   :  { %p5317_p12 = pnand %p5315_p11, %p5312_p10 }
  0x3b   :  { %5320 = shalt.err (!%p5317_p12)
}
  0x3c   :  { %s5321_s16 = scalar_lea.vmem %s58_s22, 16384  ;;  %p5326_p0 = scmp.lt.s32.totalorder %s58_s22, %s58_s22 }
  0x3d   :  { %p5322_p13 = scmp.ne.s32.totalorder %s58_s22, %s5321_s16  ;;  %p5327_p1 = scmp.lt.s32.totalorder %s5321_s16, %s5321_s16 }
  0x3f   :  { %p5328_p2 = por %p5327_p1, %p5326_p0 }
  0x41   :  { %p5329_p3 = pnand %p5328_p2, %p5322_p13 }
  0x43   :  { %5332 = shalt.err (!%p5329_p3)
}
  0x44   :  { %s5394_s2 = smov 64   ;;  %s5395_s1 = smov 4  }
  0x45   :  { %63 = dma.hbm_to_vmem [thread:$0]  %s5928_s3, 16384, %s58_s22, [#allocation9], %s5394_s2, %s5394_s2, %s5395_s1  }
  0x46   :  { %5377 = dma.done.wait [#allocation3], 256  }
  0x47   :  { %5378 = vsyncadd [#allocation3], 4294967040 }
  0x48   :  { %5379 = dma.done.wait [#allocation6], 34816  }
  0x49   :  { %5380 = vsyncadd [#allocation6], 4294932480 }
  0x4a   :  { %5381 = dma.done.wait [#allocation9], 16384  }
  0x4b   :  { %5382 = vsyncadd [#allocation9], 4294950912  ;;  %v79_v0 = vld [vmem:[#allocation5] sm:$0xff]  ;;  %v80_v1 = vld [vmem:[#allocation5 + $0x8] sm:$0xff]  ;;  %v172_v27 = vlaneseq  ;;  %s5404_s3 = smov [#allocation11]  }
  0x4c   :  { %v81_v2 = vld [vmem:[#allocation5 + $0x10] sm:$0xff]  ;;  %v4914_v3 = vpack.c.bf16 %v80_v1, %v79_v0  ;;  %v82_v4 = vld [vmem:[#allocation5 + $0x18] sm:$0xff]  ;;  %v83_v6 = vld [vmem:[#allocation5 + $0x20] sm:$0xff]  ;;  %s4251_s19 = sshll.u32 %s5404_s3, 4  ;;  %s4252_s19 = int_to_ptr.vmem [resolvable:$true] %s4251_s19 }
  0x4d   :  { %v4918_v5 = vpack.c.bf16 %v82_v4, %v81_v2  ;;  %v84_v7 = vld [vmem:[#allocation5 + $0x28] sm:$0xff]  ;;  %v85_v8 = vld [vmem:[#allocation5 + $0x30] sm:$0xff]  ;;  %v86_v10 = vld [vmem:[#allocation5 + $0x38] sm:$0xff]  ;;  %v5500_v28 = vand.u32 127, %v172_v27  ;;  %s5333_s20 = scalar_lea.vmem %s4252_s19, 256  ;;  %p5338_p5 = scmp.lt.s32.totalorder %s4252_s19, %s4252_s19 }
  0x4e   :  { %4915 = vmatprep.subr.bf16.mxu0 %v4914_v3  ;;  %v4922_v9 = vpack.c.bf16 %v84_v7, %v83_v6  ;;  %v77_v11 = vld [vmem:[#allocation2] sm:$0xff]  ;;  %v78_v12 = vld [vmem:[#allocation2 + $0x8] sm:$0xff]  ;;  %v87_v14 = vld [vmem:[#allocation5 + $0x40] sm:$0xff]  ;;  %v4926_v16 = vpack.c.bf16 %v86_v10, %v85_v8  ;;  %p5334_p4 = scmp.ne.s32.totalorder %s4252_s19, %s5333_s20  ;;  %p5339_p6 = scmp.lt.s32.totalorder %s5333_s20, %s5333_s20 }
  0x4f   :  { %4917 = vmatpush3.bf16.msra.mxu0 %v4914_v3  ;;  %4911 = vmatprep.mubr.f32.mxu0 %v77_v11  ;;  %v5498_v13 = vpack.c.bf16 %v78_v12, %v77_v11  ;;  %v88_v15 = vld [vmem:[#allocation5 + $0x48] sm:$0xff]  ;;  %v89_v17 = vld [vmem:[#allocation5 + $0x50] sm:$0xff]  ;;  %v90_v18 = vld [vmem:[#allocation5 + $0x58] sm:$0xff]  ;;  %vm174_vm0 = vcmp.lt.s32.totalorder %v5500_v28, 8 }
  0x50   :  { %4919 = vmatprep.subr.bf16.mxu0 %v4918_v5  ;;  %v4930_v19 = vpack.c.bf16 %v88_v15, %v87_v14  ;;  %v91_v20 = vld [vmem:[#allocation5 + $0x60] sm:$0xff]  ;;  %v92_v21 = vld [vmem:[#allocation5 + $0x68] sm:$0xff]  ;;  %v4934_v22 = vpack.c.bf16 %v90_v18, %v89_v17  ;;  %v93_v23 = vld [vmem:[#allocation5 + $0x70] sm:$0xff]  ;;  %p5340_p7 = por %p5339_p6, %p5338_p5 }
  0x51   :  { %v94_v24 = vld [vmem:[#allocation5 + $0x78] sm:$0xff]  ;;  %v4938_v25 = vpack.c.bf16 %v92_v21, %v91_v20  ;;  %v286_v11 = vld [vmem:[#allocation7] sm:$0xff]  ;;  %v287_v14 = vld [vmem:[#allocation7 + $0x8] sm:$0xff]  ;;  %v5396_v20 = vmov 0  }
  0x52   :  { %v4942_v26 = vpack.c.bf16 %v94_v24, %v93_v23  ;;  %v303_v17 = vld [vmem:[#allocation7 + $0x88] sm:$0xff]  ;;  %v318_v18 = vld [vmem:[#allocation7 + $0x100] sm:$0xff]  ;;  %1854 = vmatprep.mubr.bf16.mxu1 %v5396_v20  ;;  %4965 = vset.pattern.permute.xlu0 %v5396_v20  ;;  %p5341_p8 = pnand %p5340_p7, %p5334_p4 }
  0x53   :  { %4921 = vmatpush3.bf16.msra.mxu0 %v4918_v5  ;;  %v4271_v21 = vcombine.low %v287_v14, %v303_v17  ;;  %v319_v24 = vld [vmem:[#allocation7 + $0x108] sm:$0xff]  ;;  %4966 = vset.pattern.permute.xlu1 %v5396_v20 }
  0x54   :  { %4923 = vmatprep.subr.bf16.mxu0 %v4922_v9 }
  0x57   :  { %4925 = vmatpush3.bf16.msra.mxu0 %v4922_v9 }
  0x58   :  { %4927 = vmatprep.subr.bf16.mxu0 %v4926_v16 }
  0x5b   :  { %4929 = vmatpush3.bf16.msra.mxu0 %v4926_v16 }
  0x5c   :  { %4931 = vmatprep.subr.bf16.mxu0 %v4930_v19 }
  0x5f   :  { %4933 = vmatpush3.bf16.msra.mxu0 %v4930_v19  ;;  %v334_v19 = vld [vmem:[#allocation7 + $0x180] sm:$0xff] }
  0x60   :  { %4935 = vmatprep.subr.bf16.mxu0 %v4934_v22  ;;  %v4302_v23 = vcombine.high %v318_v18, %v334_v19 }
  0x63   :  { %4937 = vmatpush3.bf16.msra.mxu0 %v4934_v22  ;;  %v4272_v22 = vcombine.high %v287_v14, %v303_v17  ;;  %v527_v14 = vld [vmem:[#allocation7 + $0x788] sm:$0xff] }
  0x64   :  { %4939 = vmatprep.subr.bf16.mxu0 %v4938_v25 }
  0x67   :  { %4941 = vmatpush3.bf16.msra.mxu0 %v4938_v25  ;;  %v335_v25 = vld [vmem:[#allocation7 + $0x188] sm:$0xff] }
  0x68   :  { %4943 = vmatprep.subr.bf16.mxu0 %v4942_v26  ;;  %v4304_v27 = vcombine.high %v319_v24, %v335_v25 }
  0x6b   :  { %4945 = vmatpush3.bf16.msra.mxu0 %v4942_v26  ;;  %v350_v26 = vld [vmem:[#allocation7 + $0x200] sm:$0xff] }
  0x6c   :  { %1865 = vmatprep.subr.bf16.mxu0 %v4272_v22  ;;  %v289_v22 = vld [vmem:[#allocation7 + $0x18] sm:$0xff] }
  0x6e   :  { %4912 = vmatmul.mubr.f32.vlgmr.msra.gmra.mrb[0].mxu0 %v78_v12  ;;  %v302_v12 = vld [vmem:[#allocation7 + $0x80] sm:$0xff] }
  0x6f   :  { %v4270_v15 = vcombine.high %v286_v11, %v302_v12  ;;  %v4269_v16 = vcombine.low %v286_v11, %v302_v12  ;;  %1897 = vmatprep.mubr.bf16.mxu0 %v5396_v20  ;;  %1866 = vmatpush1.bf16.msra.mxu0 %v4271_v21  ;;  %v526_v11 = vld [vmem:[#allocation7 + $0x780] sm:$0xff]  ;;  %v511_v12 = vld [vmem:[#allocation7 + $0x708] sm:$0xff]  ;;  %v304_v21 = vld [vmem:[#allocation7 + $0x90] sm:$0xff] }
  0x70   :  { %1867 = vmatprep.subr.bf16.mxu0 %v4304_v27 }
  0x71   :  { %1822 = vmatprep.subr.bf16.mxu1 %v4270_v15 }
  0x72   :  { %1823 = vmatpush1.bf16.msra.mxu1 %v4269_v16 }
  0x73   :  { %1824 = vmatprep.subr.bf16.mxu1 %v4302_v23  ;;  %v305_v23 = vld [vmem:[#allocation7 + $0x98] sm:$0xff] }
  0x74   :  { %v4276_v27 = vcombine.high %v289_v22, %v305_v23 }
 0x141   :  { %v4913_v29 = vpop.f32.mrb[0].mxu0 }
 0x142   :  { %171 = vst [vmem:[#allocation11 + $0x8] sm:$0xff] %v4913_v29  ;;  %v161_v30 = vpop.f32.mrb[1].mxu0  ;;  %v176_v32 = vsel %vm174_vm0, %v4913_v29, -1e+30  ;;  %v366_v29 = vld [vmem:[#allocation7 + $0x280] sm:$0xff] }
 0x143   :  { %170 = vst [vmem:[#allocation11] sm:$0xff] %v161_v30  ;;  %v175_v31 = vsel %vm174_vm0, %v161_v30, -1e+30  ;;  %v351_v30 = vld [vmem:[#allocation7 + $0x208] sm:$0xff] }
 0x144   :  { %177 = vmax.xlane.f32.xlu0 %v175_v31 }
 0x148   :  { %179 = vmax.xlane.f32.xlu0 %v176_v32 }
 0x1d1   :  { %v178_v33 = vpop.xlane.xlu0 %177 }
 0x1d2   :  { %v181_v34 = vsub.f32 %v175_v31, %v178_v33  ;;  %v367_v31 = vld [vmem:[#allocation7 + $0x288] sm:$0xff]  ;;  %v4303_v33 = vcombine.low %v319_v24, %v335_v25  ;;  %v4495_v25 = vcombine.low %v511_v12, %v527_v14 }
 0x1d4   :  { %v183_v35 = vmul.f32 1.442695, %v181_v34  ;;  %v4334_v34 = vcombine.high %v350_v26, %v366_v29  ;;  %1868 = vmatpush1.bf16.msra.mxu0 %v4303_v33 }
 0x1d5   :  { %v180_v36 = vpop.xlane.xlu0 %179 }
 0x1d6   :  { %5105 = vpow2.f32 %v183_v35  ;;  %v182_v37 = vsub.f32 %v176_v32, %v180_v36  ;;  %v4301_v32 = vcombine.low %v318_v18, %v334_v19  ;;  %v4336_v35 = vcombine.high %v351_v30, %v367_v31  ;;  %v382_v36 = vld [vmem:[#allocation7 + $0x300] sm:$0xff]  ;;  %v288_v19 = vld [vmem:[#allocation7 + $0x10] sm:$0xff] }
 0x1d7   :  { %v4496_v18 = vcombine.high %v511_v12, %v527_v14  ;;  %v4273_v33 = vcombine.low %v288_v19, %v304_v21  ;;  %v496_v12 = vld [vmem:[#allocation7 + $0x690] sm:$0xff]  ;;  %v481_v14 = vld [vmem:[#allocation7 + $0x618] sm:$0xff] }
 0x1d8   :  { %v185_v38 = vmul.f32 1.442695, %v182_v37  ;;  %v398_v37 = vld [vmem:[#allocation7 + $0x380] sm:$0xff]  ;;  %1825 = vmatpush1.bf16.msra.mxu1 %v4301_v32  ;;  %1869 = vmatprep.subr.bf16.mxu0 %v4336_v35  ;;  %v337_v32 = vld [vmem:[#allocation7 + $0x198] sm:$0xff] }
 0x1d9   :  { %1826 = vmatprep.subr.bf16.mxu1 %v4334_v34  ;;  %v4275_v34 = vcombine.low %v289_v22, %v305_v23  ;;  %v528_v22 = vld [vmem:[#allocation7 + $0x790] sm:$0xff] }
 0x1da   :  { %5107 = vpow2.f32 %v185_v38  ;;  %v383_v38 = vld [vmem:[#allocation7 + $0x308] sm:$0xff] }
 0x1e0   :  { %v5106_v39 = vpop.eup %5105 }
 0x1e1   :  { %187 = vadd.xlane.f32.xlu1 %v5106_v39 }
 0x1e4   :  { %v5108_v40 = vpop.eup %5107 }
 0x1e5   :  { %189 = vadd.xlane.f32.xlu1 %v5108_v40 }
 0x26e   :  { %v188_v41 = vpop.xlane.xlu1 %187 }
 0x26f   :  { %5109 = vrcp.f32 %v188_v41  ;;  %v4335_v41 = vcombine.low %v351_v30, %v367_v31  ;;  %v336_v30 = vld [vmem:[#allocation7 + $0x190] sm:$0xff]  ;;  %v321_v31 = vld [vmem:[#allocation7 + $0x118] sm:$0xff] }
 0x271   :  { %1870 = vmatpush1.bf16.msra.mxu0 %v4335_v41 }
 0x272   :  { %v190_v42 = vpop.xlane.xlu1 %189 }
 0x273   :  { %5111 = vrcp.f32 %v190_v42  ;;  %v4366_v42 = vcombine.high %v382_v36, %v398_v37 }
 0x279   :  { %v5110_v43 = vpop.eup %5109 }
 0x27a   :  { %v5503_v44 = vmul.f32 %v5110_v43, %v5106_v39  ;;  %v399_v39 = vld [vmem:[#allocation7 + $0x388] sm:$0xff] }
 0x27b   :  { %v4368_v43 = vcombine.high %v383_v38, %v399_v39 }
 0x27c   :  { %195 = vmax.xlane.f32.xlu0 %v5503_v44 }
 0x27d   :  { %v5112_v45 = vpop.eup %5111  ;;  %1871 = vmatprep.subr.bf16.mxu0 %v4368_v43 }
 0x27e   :  { %v5506_v46 = vmul.f32 %v5112_v45, %v5108_v40  ;;  %v4333_v40 = vcombine.low %v350_v26, %v366_v29  ;;  %v414_v45 = vld [vmem:[#allocation7 + $0x400] sm:$0xff]  ;;  %v4274_v26 = vcombine.high %v288_v19, %v304_v21  ;;  %v320_v29 = vld [vmem:[#allocation7 + $0x110] sm:$0xff] }
 0x27f   :  { %v4306_v35 = vcombine.high %v320_v29, %v336_v30  ;;  %v4305_v41 = vcombine.low %v320_v29, %v336_v30  ;;  %v512_v21 = vld [vmem:[#allocation7 + $0x710] sm:$0xff] }
 0x280   :  { %197 = vmax.xlane.f32.xlu1 %v5506_v46  ;;  %1827 = vmatpush1.bf16.msra.mxu1 %v4333_v40  ;;  %v369_v40 = vld [vmem:[#allocation7 + $0x298] sm:$0xff] }
 0x281   :  { %1828 = vmatprep.subr.bf16.mxu1 %v4366_v42  ;;  %v4307_v42 = vcombine.low %v321_v31, %v337_v32 }
 0x309   :  { %v196_v47 = vpop.xlane.xlu0 %195 }
 0x30a   :  { %vm199_vm1 = vcmp.eq.f32.partialorder %v5503_v44, %v196_v47  ;;  %v430_v47 = vld [vmem:[#allocation7 + $0x480] sm:$0xff] }
 0x30b   :  { %v201_v48 = vsel %vm199_vm1, %v5500_v28, 128 }
 0x30c   :  { %v204_v49 = vshra.s32 %v201_v48, 16  ;;  %v203_v55 = vand.u32 65535, %v201_v48  ;;  %v415_v48 = vld [vmem:[#allocation7 + $0x408] sm:$0xff] }
 0x30d   :  { %v198_v50 = vpop.xlane.xlu1 %197 }
 0x30e   :  { %vm200_vm2 = vcmp.eq.f32.partialorder %v5506_v46, %v198_v50  ;;  %v206_v51 = vcvt.s32.f32 %v204_v49  ;;  %v205_v58 = vcvt.s32.f32 %v203_v55  ;;  %v431_v49 = vld [vmem:[#allocation7 + $0x488] sm:$0xff]  ;;  %v4365_v50 = vcombine.low %v382_v36, %v398_v37  ;;  %v462_v55 = vld [vmem:[#allocation7 + $0x580] sm:$0xff]  ;;  %v352_v37 = vld [vmem:[#allocation7 + $0x210] sm:$0xff] }
 0x30f   :  { %v202_v52 = vsel %vm200_vm2, %v5500_v28, 128  ;;  %v4308_v36 = vcombine.high %v321_v31, %v337_v32 }
 0x310   :  { %207 = vmin.xlane.f32.xlu0 %v206_v51  ;;  %v218_v53 = vshra.s32 %v202_v52, 16  ;;  %v217_v56 = vand.u32 65535, %v202_v52  ;;  %v4398_v52 = vcombine.high %v414_v45, %v430_v47  ;;  %1829 = vmatpush1.bf16.msra.mxu1 %v4365_v50  ;;  %v401_v50 = vld [vmem:[#allocation7 + $0x398] sm:$0xff] }
 0x312   :  { %v220_v54 = vcvt.s32.f32 %v218_v53  ;;  %v219_v61 = vcvt.s32.f32 %v217_v56  ;;  %v4400_v53 = vcombine.high %v415_v48, %v431_v49  ;;  %v447_v56 = vld [vmem:[#allocation7 + $0x508] sm:$0xff]  ;;  %1830 = vmatprep.subr.bf16.mxu1 %v4398_v52 }
 0x314   :  { %221 = vmin.xlane.f32.xlu1 %v220_v54 }
 0x39d   :  { %v208_v57 = vpop.xlane.xlu0 %207 }
 0x39e   :  { %vm209_vm3 = vcmp.eq.f32.partialorder %v206_v51, %v208_v57  ;;  %v214_v63 = vcvt.f32.s32 %v208_v57  ;;  %v4367_v51 = vcombine.low %v383_v38, %v399_v39  ;;  %v463_v57 = vld [vmem:[#allocation7 + $0x588] sm:$0xff]  ;;  %v368_v38 = vld [vmem:[#allocation7 + $0x290] sm:$0xff]  ;;  %v353_v39 = vld [vmem:[#allocation7 + $0x218] sm:$0xff] }
 0x39f   :  { %v210_v59 = vsel %vm209_vm3, %v205_v58, inf  ;;  %v4397_v58 = vcombine.low %v414_v45, %v430_v47  ;;  %v4338_v43 = vcombine.high %v352_v37, %v368_v38  ;;  %v4340_v45 = vcombine.high %v353_v39, %v369_v40  ;;  %v384_v47 = vld [vmem:[#allocation7 + $0x310] sm:$0xff] }
 0x3a0   :  { %211 = vmin.xlane.f32.xlu0 %v210_v59  ;;  %v215_v1 = vshll.u32 %v214_v63, 16  ;;  %1872 = vmatpush1.bf16.msra.mxu0 %v4367_v51  ;;  %v4399_v59 = vcombine.low %v415_v48, %v431_v49  ;;  %v494_v63 = vld [vmem:[#allocation7 + $0x680] sm:$0xff]  ;;  %v400_v48 = vld [vmem:[#allocation7 + $0x390] sm:$0xff]  ;;  %v385_v49 = vld [vmem:[#allocation7 + $0x318] sm:$0xff]  ;;  %v4337_v51 = vcombine.low %v352_v37, %v368_v38  ;;  %v4339_v52 = vcombine.low %v353_v39, %v369_v40 }
 0x3a1   :  { %v222_v60 = vpop.xlane.xlu1 %221  ;;  %1873 = vmatprep.subr.bf16.mxu0 %v4400_v53  ;;  %1831 = vmatpush1.bf16.msra.mxu1 %v4397_v58  ;;  %v4370_v53 = vcombine.high %v384_v47, %v400_v48  ;;  %v433_v58 = vld [vmem:[#allocation7 + $0x498] sm:$0xff]  ;;  %v290_v39 = vld [vmem:[#allocation7 + $0x20] sm:$0xff] }
 0x3a2   :  { %vm223_vm4 = vcmp.eq.f32.partialorder %v220_v54, %v222_v60  ;;  %v228_v2 = vcvt.f32.s32 %v222_v60  ;;  %v446_v54 = vld [vmem:[#allocation7 + $0x500] sm:$0xff] }
 0x3a3   :  { %v224_v62 = vsel %vm223_vm4, %v219_v61, inf  ;;  %v4430_v60 = vcombine.high %v446_v54, %v462_v55  ;;  %v4432_v61 = vcombine.high %v447_v56, %v463_v57  ;;  %v306_v40 = vld [vmem:[#allocation7 + $0xa0] sm:$0xff] }
 0x3a4   :  { %225 = vmin.xlane.f32.xlu1 %v224_v62  ;;  %v229_v6 = vshll.u32 %v228_v2, 16  ;;  %v478_v62 = vld [vmem:[#allocation7 + $0x600] sm:$0xff]  ;;  %v4429_v2 = vcombine.low %v446_v54, %v462_v55  ;;  %1874 = vmatpush1.bf16.msra.mxu0 %v4399_v59  ;;  %v4372_v54 = vcombine.high %v385_v49, %v401_v50  ;;  %v416_v55 = vld [vmem:[#allocation7 + $0x410] sm:$0xff]  ;;  %v4369_v59 = vcombine.low %v384_v47, %v400_v48 }
 0x3a5   :  { %1832 = vmatprep.subr.bf16.mxu1 %v4430_v60  ;;  %1875 = vmatprep.subr.bf16.mxu0 %v4432_v61  ;;  %v4461_v15 = vcombine.low %v478_v62, %v494_v63  ;;  %v4371_v60 = vcombine.low %v385_v49, %v401_v50  ;;  %v322_v48 = vld [vmem:[#allocation7 + $0x120] sm:$0xff] }
 0x3a6   :  { %1833 = vmatpush1.bf16.msra.mxu1 %v4429_v2  ;;  %v465_v2 = vld [vmem:[#allocation7 + $0x598] sm:$0xff]  ;;  %v338_v49 = vld [vmem:[#allocation7 + $0x1a0] sm:$0xff] }
 0x3a7   :  { %v4310_v50 = vcombine.high %v322_v48, %v338_v49 }
 0x42d   :  { %v212_v0 = vpop.xlane.xlu0 %211 }
 0x42e   :  { %v213_v3 = vcvt.f32.s32 %v212_v0  ;;  %v479_v0 = vld [vmem:[#allocation7 + $0x608] sm:$0xff] }
 0x430   :  { %v5513_v4 = vadd.s32 %v215_v1, %v213_v3  ;;  %v495_v1 = vld [vmem:[#allocation7 + $0x688] sm:$0xff]  ;;  %v4431_v3 = vcombine.low %v447_v56, %v463_v57  ;;  %v432_v56 = vld [vmem:[#allocation7 + $0x490] sm:$0xff]  ;;  %v417_v57 = vld [vmem:[#allocation7 + $0x418] sm:$0xff] }
 0x431   :  { %v226_v5 = vpop.xlane.xlu1 %225  ;;  %v4463_v16 = vcombine.low %v479_v0, %v495_v1  ;;  %v4402_v61 = vcombine.high %v416_v55, %v432_v56 }
 0x432   :  { %v227_v7 = vcvt.f32.s32 %v226_v5  ;;  %vm231_vm5 = vcmp.eq.s32.totalorder %v5500_v28, %v5513_v4  ;;  %v4462_v5 = vcombine.high %v478_v62, %v494_v63  ;;  %1876 = vmatpush1.bf16.msra.mxu0 %v4431_v3  ;;  %v4404_v62 = vcombine.high %v417_v57, %v433_v58  ;;  %v448_v63 = vld [vmem:[#allocation7 + $0x510] sm:$0xff] }
 0x433   :  { %v5521_v8 = vsel %vm231_vm5, -1.0, %v5503_v44  ;;  %v4401_v3 = vcombine.low %v416_v55, %v432_v56  ;;  %v354_v56 = vld [vmem:[#allocation7 + $0x220] sm:$0xff] }
 0x434   :  { %v5523_v9 = vadd.s32 %v229_v6, %v227_v7  ;;  %237 = vmax.xlane.f32.xlu0 %v5521_v8  ;;  %v4464_v6 = vcombine.high %v479_v0, %v495_v1  ;;  %v510_v7 = vld [vmem:[#allocation7 + $0x700] sm:$0xff]  ;;  %1834 = vmatprep.subr.bf16.mxu1 %v4462_v5  ;;  %v464_v0 = vld [vmem:[#allocation7 + $0x590] sm:$0xff]  ;;  %v449_v1 = vld [vmem:[#allocation7 + $0x518] sm:$0xff]  ;;  %v4403_v5 = vcombine.low %v417_v57, %v433_v58 }
 0x435   :  { %v4494_v17 = vcombine.high %v510_v7, %v526_v11  ;;  %1835 = vmatpush1.bf16.msra.mxu1 %v4461_v15  ;;  %v4493_v24 = vcombine.low %v510_v7, %v526_v11  ;;  %v4436_v7 = vcombine.high %v449_v1, %v465_v2  ;;  %v480_v11 = vld [vmem:[#allocation7 + $0x610] sm:$0xff]  ;;  %v497_v15 = vld [vmem:[#allocation7 + $0x698] sm:$0xff]  ;;  %v370_v57 = vld [vmem:[#allocation7 + $0x2a0] sm:$0xff] }
 0x436   :  { %vm232_vm6 = vcmp.eq.s32.totalorder %v5500_v28, %v5523_v9  ;;  %1877 = vmatprep.subr.bf16.mxu0 %v4464_v6  ;;  %v4434_v6 = vcombine.high %v448_v63, %v464_v0  ;;  %v4468_v19 = vcombine.high %v481_v14, %v497_v15  ;;  %v4465_v23 = vcombine.low %v480_v11, %v496_v12  ;;  %v355_v58 = vld [vmem:[#allocation7 + $0x228] sm:$0xff] }
 0x437   :  { %v5532_v10 = vsel %vm232_vm6, -1.0, %v5506_v46  ;;  %1878 = vmatpush1.bf16.msra.mxu0 %v4463_v16  ;;  %1836 = vmatprep.subr.bf16.mxu1 %v4494_v17  ;;  %v4433_v16 = vcombine.low %v448_v63, %v464_v0  ;;  %v4435_v17 = vcombine.low %v449_v1, %v465_v2  ;;  %v402_v63 = vld [vmem:[#allocation7 + $0x3a0] sm:$0xff]  ;;  %v387_v2 = vld [vmem:[#allocation7 + $0x328] sm:$0xff] }
 0x438   :  { %239 = vmax.xlane.f32.xlu1 %v5532_v10  ;;  %1879 = vmatprep.subr.bf16.mxu0 %v4496_v18  ;;  %v4466_v18 = vcombine.high %v480_v11, %v496_v12 }
 0x439   :  { %1837 = vmatpush1.bf16.msra.mxu1 %v4493_v24  ;;  %v4467_v24 = vcombine.low %v481_v14, %v497_v15  ;;  %v419_v14 = vld [vmem:[#allocation7 + $0x428] sm:$0xff] }
 0x43a   :  { %1908 = vmatprep.subr.bf16.mxu1 %v4274_v26  ;;  %v4497_v26 = vcombine.low %v512_v21, %v528_v22  ;;  %v435_v15 = vld [vmem:[#allocation7 + $0x4a8] sm:$0xff] }
 0x43b   :  { %1880 = vmatpush1.bf16.msra.mxu0 %v4495_v25  ;;  %v4498_v25 = vcombine.high %v512_v21, %v528_v22  ;;  %v4408_v21 = vcombine.high %v419_v14, %v435_v15 }
 0x43c   :  { %1951 = vmatprep.subr.bf16.mxu0 %v4276_v27  ;;  %1855 = vmatmul.mubr.bf16.vlgmr.msra.gmra.mrb[0].mxu1 %v5498_v13 }
 0x43d   :  { %1909 = vmatpush1.bf16.msra.mxu1 %v4273_v33  ;;  %1940 = vmatprep.mubr.bf16.mxu1 %v5396_v20 }
 0x43e   :  { %1898 = vmatmul.mubr.bf16.vlgmr.msra.gmra.mrb[4].mxu0 %v5498_v13  ;;  %1910 = vmatprep.subr.bf16.mxu1 %v4306_v35 }
 0x43f   :  { %1952 = vmatpush1.bf16.msra.mxu0 %v4275_v34  ;;  %1983 = vmatprep.mubr.bf16.mxu0 %v5396_v20 }
 0x440   :  { %1953 = vmatprep.subr.bf16.mxu0 %v4308_v36  ;;  %v529_v36 = vld [vmem:[#allocation7 + $0x798] sm:$0xff] }
 0x441   :  { %1911 = vmatpush1.bf16.msra.mxu1 %v4305_v41  ;;  %v4277_v41 = vcombine.low %v290_v39, %v306_v40 }
 0x442   :  { %1912 = vmatprep.subr.bf16.mxu1 %v4338_v43  ;;  %v307_v43 = vld [vmem:[#allocation7 + $0xa8] sm:$0xff] }
 0x443   :  { %1954 = vmatpush1.bf16.msra.mxu0 %v4307_v42  ;;  %v291_v42 = vld [vmem:[#allocation7 + $0x28] sm:$0xff] }
 0x444   :  { %1955 = vmatprep.subr.bf16.mxu0 %v4340_v45  ;;  %v4280_v45 = vcombine.high %v291_v42, %v307_v43  ;;  %v4279_v47 = vcombine.low %v291_v42, %v307_v43  ;;  %v515_v42 = vld [vmem:[#allocation7 + $0x728] sm:$0xff] }
 0x445   :  { %1913 = vmatpush1.bf16.msra.mxu1 %v4337_v51  ;;  %v4309_v51 = vcombine.low %v322_v48, %v338_v49  ;;  %v531_v43 = vld [vmem:[#allocation7 + $0x7a8] sm:$0xff]  ;;  %v292_v48 = vld [vmem:[#allocation7 + $0x30] sm:$0xff] }
 0x446   :  { %1914 = vmatprep.subr.bf16.mxu1 %v4370_v53  ;;  %v339_v53 = vld [vmem:[#allocation7 + $0x1a8] sm:$0xff]  ;;  %v308_v49 = vld [vmem:[#allocation7 + $0xb0] sm:$0xff] }
 0x447   :  { %1956 = vmatpush1.bf16.msra.mxu0 %v4339_v52  ;;  %v323_v52 = vld [vmem:[#allocation7 + $0x128] sm:$0xff] }
 0x448   :  { %1957 = vmatprep.subr.bf16.mxu0 %v4372_v54  ;;  %v4311_v54 = vcombine.low %v323_v52, %v339_v53  ;;  %v4312_v55 = vcombine.high %v323_v52, %v339_v53  ;;  %v293_v52 = vld [vmem:[#allocation7 + $0x38] sm:$0xff] }
 0x449   :  { %1915 = vmatpush1.bf16.msra.mxu1 %v4369_v59  ;;  %v4341_v59 = vcombine.low %v354_v56, %v370_v57  ;;  %v309_v53 = vld [vmem:[#allocation7 + $0xb8] sm:$0xff] }
 0x44a   :  { %1916 = vmatprep.subr.bf16.mxu1 %v4402_v61  ;;  %v371_v61 = vld [vmem:[#allocation7 + $0x2a8] sm:$0xff] }
 0x44b   :  { %1958 = vmatpush1.bf16.msra.mxu0 %v4371_v60  ;;  %v4342_v60 = vcombine.high %v354_v56, %v370_v57  ;;  %v4344_v0 = vcombine.high %v355_v58, %v371_v61  ;;  %v324_v56 = vld [vmem:[#allocation7 + $0x130] sm:$0xff] }
 0x44c   :  { %1959 = vmatprep.subr.bf16.mxu0 %v4404_v62  ;;  %v386_v62 = vld [vmem:[#allocation7 + $0x320] sm:$0xff]  ;;  %v340_v57 = vld [vmem:[#allocation7 + $0x1b0] sm:$0xff] }
 0x44d   :  { %1917 = vmatpush1.bf16.msra.mxu1 %v4401_v3  ;;  %v4374_v1 = vcombine.high %v386_v62, %v402_v63  ;;  %v403_v3 = vld [vmem:[#allocation7 + $0x3a8] sm:$0xff]  ;;  %v4373_v12 = vcombine.low %v386_v62, %v402_v63  ;;  %v4314_v62 = vcombine.high %v324_v56, %v340_v57  ;;  %v4283_v63 = vcombine.low %v293_v52, %v309_v53 }
 0x44e   :  { %1918 = vmatprep.subr.bf16.mxu1 %v4434_v6  ;;  %v418_v6 = vld [vmem:[#allocation7 + $0x420] sm:$0xff]  ;;  %v4376_v11 = vcombine.high %v387_v2, %v403_v3 }
 0x44f   :  { %1960 = vmatpush1.bf16.msra.mxu0 %v4403_v5  ;;  %v4343_v5 = vcombine.low %v355_v58, %v371_v61  ;;  %v4284_v58 = vcombine.high %v293_v52, %v309_v53  ;;  %v341_v61 = vld [vmem:[#allocation7 + $0x1b8] sm:$0xff]  ;;  %v532_v52 = vld [vmem:[#allocation7 + $0x7b0] sm:$0xff] }
 0x450   :  { %1961 = vmatprep.subr.bf16.mxu0 %v4436_v7  ;;  %v434_v7 = vld [vmem:[#allocation7 + $0x4a0] sm:$0xff] }
 0x451   :  { %1919 = vmatpush1.bf16.msra.mxu1 %v4433_v16  ;;  %v4406_v16 = vcombine.high %v418_v6, %v434_v7  ;;  %v4405_v22 = vcombine.low %v418_v6, %v434_v7  ;;  %v373_v6 = vld [vmem:[#allocation7 + $0x2b8] sm:$0xff] }
 0x452   :  { %1920 = vmatprep.subr.bf16.mxu1 %v4466_v18  ;;  %v450_v18 = vld [vmem:[#allocation7 + $0x520] sm:$0xff] }
 0x453   :  { %1962 = vmatpush1.bf16.msra.mxu0 %v4435_v17  ;;  %v4375_v17 = vcombine.low %v387_v2, %v403_v3  ;;  %v4313_v3 = vcombine.low %v324_v56, %v340_v57  ;;  %v533_v56 = vld [vmem:[#allocation7 + $0x7b8] sm:$0xff] }
 0x454   :  { %1963 = vmatprep.subr.bf16.mxu0 %v4468_v19  ;;  %v466_v19 = vld [vmem:[#allocation7 + $0x5a0] sm:$0xff] }
 0x455   :  { %1921 = vmatpush1.bf16.msra.mxu1 %v4465_v23  ;;  %v451_v23 = vld [vmem:[#allocation7 + $0x528] sm:$0xff] }
 0x456   :  { %1922 = vmatprep.subr.bf16.mxu1 %v4498_v25  ;;  %v4438_v25 = vcombine.high %v450_v18, %v466_v19 }
 0x457   :  { %1964 = vmatpush1.bf16.msra.mxu0 %v4467_v24  ;;  %v467_v24 = vld [vmem:[#allocation7 + $0x5a8] sm:$0xff] }
 0x459   :  { %1923 = vmatpush1.bf16.msra.mxu1 %v4497_v26  ;;  %v4407_v26 = vcombine.low %v419_v14, %v435_v15  ;;  %v404_v14 = vld [vmem:[#allocation7 + $0x3b0] sm:$0xff] }
 0x45c   :  { %1941 = vmatmul.mubr.bf16.vlgmr.msra.gmra.mrb[4].mxu1 %v5498_v13 }
 0x45d   :  { %2026 = vmatprep.mubr.bf16.mxu1 %v5396_v20 }
 0x4c1   :  { %v238_v27 = vpop.xlane.xlu0 %237 }
 0x4c2   :  { %vm241_vm7 = vcmp.eq.f32.partialorder %v5521_v8, %v238_v27  ;;  %v513_v8 = vld [vmem:[#allocation7 + $0x718] sm:$0xff]  ;;  %v482_v27 = vld [vmem:[#allocation7 + $0x620] sm:$0xff] }
 0x4c3   :  { %v5547_v29 = vsel %vm241_vm7, %v5500_v28, 128  ;;  %v4500_v37 = vcombine.high %v513_v8, %v529_v36  ;;  %v4499_v38 = vcombine.low %v513_v8, %v529_v36  ;;  %v483_v8 = vld [vmem:[#allocation7 + $0x628] sm:$0xff] }
 0x4c4   :  { %v246_v30 = vshra.s32 %v5547_v29, 16  ;;  %v499_v36 = vld [vmem:[#allocation7 + $0x6a8] sm:$0xff] }
 0x4c5   :  { %v240_v31 = vpop.xlane.xlu1 %239  ;;  %1965 = vmatprep.subr.bf16.mxu0 %v4500_v37 }
 0x4c6   :  { %vm242_vm8 = vcmp.eq.f32.partialorder %v5532_v10, %v240_v31  ;;  %v5551_v32 = vcvt.s32.f32 %v246_v30  ;;  %v4278_v10 = vcombine.high %v290_v39, %v306_v40  ;;  %1966 = vmatpush1.bf16.msra.mxu0 %v4499_v38  ;;  %v498_v30 = vld [vmem:[#allocation7 + $0x6a0] sm:$0xff]  ;;  %v4440_v31 = vcombine.high %v451_v23, %v467_v24 }
 0x4c7   :  { %v5554_v33 = vsel %vm242_vm8, %v5500_v28, 128  ;;  %2037 = vmatprep.subr.bf16.mxu0 %v4280_v45  ;;  %v4470_v37 = vcombine.high %v482_v27, %v498_v30  ;;  %v4439_v38 = vcombine.low %v451_v23, %v467_v24  ;;  %v514_v39 = vld [vmem:[#allocation7 + $0x720] sm:$0xff]  ;;  %v436_v23 = vld [vmem:[#allocation7 + $0x4b0] sm:$0xff] }
 0x4c8   :  { %249 = vmin.xlane.f32.xlu0 %v5551_v32  ;;  %v260_v34 = vshra.s32 %v5554_v33, 16  ;;  %1994 = vmatprep.subr.bf16.mxu1 %v4278_v10  ;;  %v530_v40 = vld [vmem:[#allocation7 + $0x7a0] sm:$0xff]  ;;  %v4472_v10 = vcombine.high %v483_v8, %v499_v36 }
 0x4c9   :  { %1995 = vmatpush1.bf16.msra.mxu1 %v4277_v41  ;;  %1984 = vmatmul.mubr.bf16.vlgmr.msra.gmra.mrb[8].mxu0 %v5498_v13  ;;  %v4469_v41 = vcombine.low %v482_v27, %v498_v30  ;;  %v4502_v45 = vcombine.high %v514_v39, %v530_v40  ;;  %v437_v27 = vld [vmem:[#allocation7 + $0x4b8] sm:$0xff] }
 0x4ca   :  { %v5558_v35 = vcvt.s32.f32 %v260_v34  ;;  %2038 = vmatpush1.bf16.msra.mxu0 %v4279_v47  ;;  %2069 = vmatprep.mubr.bf16.mxu0 %v5396_v20  ;;  %v4437_v34 = vcombine.low %v450_v18, %v466_v19  ;;  %v4471_v47 = vcombine.low %v483_v8, %v499_v36  ;;  %v405_v18 = vld [vmem:[#allocation7 + $0x3b8] sm:$0xff]  ;;  %v468_v8 = vld [vmem:[#allocation7 + $0x5b0] sm:$0xff] }
 0x4cb   :  { %1996 = vmatprep.subr.bf16.mxu1 %v4310_v50  ;;  %2039 = vmatprep.subr.bf16.mxu0 %v4312_v55  ;;  %v4504_v50 = vcombine.high %v515_v42, %v531_v43  ;;  %v4503_v55 = vcombine.low %v515_v42, %v531_v43  ;;  %v500_v42 = vld [vmem:[#allocation7 + $0x6b0] sm:$0xff] }
 0x4cc   :  { %263 = vmin.xlane.f32.xlu1 %v5558_v35 }
 0x4cd   :  { %1997 = vmatpush1.bf16.msra.mxu1 %v4309_v51  ;;  %v4501_v51 = vcombine.low %v514_v39, %v530_v40  ;;  %v469_v39 = vld [vmem:[#allocation7 + $0x5b8] sm:$0xff] }
 0x4ce   :  { %2040 = vmatpush1.bf16.msra.mxu0 %v4311_v54  ;;  %1998 = vmatprep.subr.bf16.mxu1 %v4342_v60  ;;  %v4282_v54 = vcombine.high %v292_v48, %v308_v49  ;;  %v325_v60 = vld [vmem:[#allocation7 + $0x138] sm:$0xff] }
 0x4cf   :  { %2041 = vmatprep.subr.bf16.mxu0 %v4344_v0  ;;  %v356_v0 = vld [vmem:[#allocation7 + $0x230] sm:$0xff]  ;;  %v4316_v2 = vcombine.high %v325_v60, %v341_v61 }
 0x4d1   :  { %1999 = vmatpush1.bf16.msra.mxu1 %v4341_v59  ;;  %v4281_v59 = vcombine.low %v292_v48, %v308_v49  ;;  %v501_v48 = vld [vmem:[#allocation7 + $0x6b8] sm:$0xff] }
 0x4d2   :  { %2000 = vmatprep.subr.bf16.mxu1 %v4374_v1  ;;  %2042 = vmatpush1.bf16.msra.mxu0 %v4343_v5  ;;  %v372_v1 = vld [vmem:[#allocation7 + $0x2b0] sm:$0xff]  ;;  %v357_v5 = vld [vmem:[#allocation7 + $0x238] sm:$0xff] }
 0x4d3   :  { %2043 = vmatprep.subr.bf16.mxu0 %v4376_v11  ;;  %v4346_v7 = vcombine.high %v356_v0, %v372_v1  ;;  %v4315_v11 = vcombine.low %v325_v60, %v341_v61  ;;  %v4348_v15 = vcombine.high %v357_v5, %v373_v6  ;;  %v310_v60 = vld [vmem:[#allocation7 + $0xc0] sm:$0xff] }
 0x4d5   :  { %2001 = vmatpush1.bf16.msra.mxu1 %v4373_v12  ;;  %v388_v12 = vld [vmem:[#allocation7 + $0x330] sm:$0xff] }
 0x4d6   :  { %2002 = vmatprep.subr.bf16.mxu1 %v4406_v16  ;;  %2044 = vmatpush1.bf16.msra.mxu0 %v4375_v17  ;;  %v4345_v16 = vcombine.low %v356_v0, %v372_v1  ;;  %v389_v17 = vld [vmem:[#allocation7 + $0x338] sm:$0xff]  ;;  %v4378_v19 = vcombine.high %v388_v12, %v404_v14  ;;  %v311_v0 = vld [vmem:[#allocation7 + $0xc8] sm:$0xff] }
 0x4d7   :  { %2045 = vmatprep.subr.bf16.mxu0 %v4408_v21  ;;  %v4347_v21 = vcombine.low %v357_v5, %v373_v6  ;;  %v4380_v24 = vcombine.high %v389_v17, %v405_v18  ;;  %v342_v5 = vld [vmem:[#allocation7 + $0x1c0] sm:$0xff] }
 0x4d9   :  { %2003 = vmatpush1.bf16.msra.mxu1 %v4405_v22  ;;  %v420_v22 = vld [vmem:[#allocation7 + $0x430] sm:$0xff] }
 0x4da   :  { %2004 = vmatprep.subr.bf16.mxu1 %v4438_v25  ;;  %2046 = vmatpush1.bf16.msra.mxu0 %v4407_v26  ;;  %v4377_v25 = vcombine.low %v388_v12, %v404_v14  ;;  %v421_v26 = vld [vmem:[#allocation7 + $0x438] sm:$0xff]  ;;  %v4410_v30 = vcombine.high %v420_v22, %v436_v23  ;;  %v343_v12 = vld [vmem:[#allocation7 + $0x1c8] sm:$0xff] }
 0x4db   :  { %2047 = vmatprep.subr.bf16.mxu0 %v4440_v31  ;;  %v4379_v31 = vcombine.low %v389_v17, %v405_v18  ;;  %v4412_v36 = vcombine.high %v421_v26, %v437_v27  ;;  %v374_v17 = vld [vmem:[#allocation7 + $0x2c0] sm:$0xff] }
 0x4dd   :  { %2005 = vmatpush1.bf16.msra.mxu1 %v4437_v34  ;;  %v452_v34 = vld [vmem:[#allocation7 + $0x530] sm:$0xff] }
 0x4de   :  { %2006 = vmatprep.subr.bf16.mxu1 %v4470_v37  ;;  %2048 = vmatpush1.bf16.msra.mxu0 %v4439_v38  ;;  %v4409_v37 = vcombine.low %v420_v22, %v436_v23  ;;  %v453_v38 = vld [vmem:[#allocation7 + $0x538] sm:$0xff]  ;;  %v4442_v40 = vcombine.high %v452_v34, %v468_v8  ;;  %v375_v22 = vld [vmem:[#allocation7 + $0x2c8] sm:$0xff] }
 0x4df   :  { %2049 = vmatprep.subr.bf16.mxu0 %v4472_v10  ;;  %v4411_v10 = vcombine.low %v421_v26, %v437_v27  ;;  %v4444_v43 = vcombine.high %v453_v38, %v469_v39  ;;  %v406_v26 = vld [vmem:[#allocation7 + $0x3c0] sm:$0xff] }
 0x4e1   :  { %2007 = vmatpush1.bf16.msra.mxu1 %v4469_v41  ;;  %v484_v41 = vld [vmem:[#allocation7 + $0x630] sm:$0xff] }
 0x4e2   :  { %2008 = vmatprep.subr.bf16.mxu1 %v4502_v45  ;;  %2050 = vmatpush1.bf16.msra.mxu0 %v4471_v47  ;;  %v4441_v45 = vcombine.low %v452_v34, %v468_v8  ;;  %v485_v47 = vld [vmem:[#allocation7 + $0x638] sm:$0xff]  ;;  %v4474_v49 = vcombine.high %v484_v41, %v500_v42  ;;  %v407_v34 = vld [vmem:[#allocation7 + $0x3c8] sm:$0xff] }
 0x4e3   :  { %2051 = vmatprep.subr.bf16.mxu0 %v4504_v50  ;;  %v4443_v50 = vcombine.low %v453_v38, %v469_v39  ;;  %v4476_v53 = vcombine.high %v485_v47, %v501_v48  ;;  %v438_v38 = vld [vmem:[#allocation7 + $0x4c0] sm:$0xff] }
 0x4e5   :  { %2009 = vmatpush1.bf16.msra.mxu1 %v4501_v51  ;;  %v516_v51 = vld [vmem:[#allocation7 + $0x730] sm:$0xff] }
 0x4e6   :  { %2080 = vmatprep.subr.bf16.mxu1 %v4282_v54  ;;  %2052 = vmatpush1.bf16.msra.mxu0 %v4503_v55  ;;  %v4473_v54 = vcombine.low %v484_v41, %v500_v42  ;;  %v517_v55 = vld [vmem:[#allocation7 + $0x738] sm:$0xff]  ;;  %v4506_v57 = vcombine.high %v516_v51, %v532_v52  ;;  %v439_v41 = vld [vmem:[#allocation7 + $0x4c8] sm:$0xff] }
 0x4e7   :  { %2123 = vmatprep.subr.bf16.mxu0 %v4284_v58  ;;  %v4475_v58 = vcombine.low %v485_v47, %v501_v48  ;;  %v4508_v61 = vcombine.high %v517_v55, %v533_v56  ;;  %v470_v47 = vld [vmem:[#allocation7 + $0x5c0] sm:$0xff] }
 0x4e8   :  { %2027 = vmatmul.mubr.bf16.vlgmr.msra.gmra.mrb[8].mxu1 %v5498_v13 }
 0x4e9   :  { %2081 = vmatpush1.bf16.msra.mxu1 %v4281_v59  ;;  %2112 = vmatprep.mubr.bf16.mxu1 %v5396_v20  ;;  %v294_v59 = vld [vmem:[#allocation7 + $0x40] sm:$0xff] }
 0x4ea   :  { %2070 = vmatmul.mubr.bf16.vlgmr.msra.gmra.mrb[12].mxu0 %v5498_v13  ;;  %2082 = vmatprep.subr.bf16.mxu1 %v4314_v62  ;;  %v4505_v62 = vcombine.low %v516_v51, %v532_v52  ;;  %v4286_v1 = vcombine.high %v294_v59, %v310_v60  ;;  %v471_v51 = vld [vmem:[#allocation7 + $0x5c8] sm:$0xff] }
 0x4eb   :  { %2124 = vmatpush1.bf16.msra.mxu0 %v4283_v63  ;;  %2155 = vmatprep.mubr.bf16.mxu0 %v5396_v20  ;;  %v295_v63 = vld [vmem:[#allocation7 + $0x48] sm:$0xff] }
 0x4ec   :  { %2125 = vmatprep.subr.bf16.mxu0 %v4316_v2  ;;  %v4507_v2 = vcombine.low %v517_v55, %v533_v56  ;;  %v4288_v6 = vcombine.high %v295_v63, %v311_v0  ;;  %v502_v55 = vld [vmem:[#allocation7 + $0x6c0] sm:$0xff] }
 0x4ed   :  { %2083 = vmatpush1.bf16.msra.mxu1 %v4313_v3  ;;  %v326_v3 = vld [vmem:[#allocation7 + $0x140] sm:$0xff] }
 0x4ee   :  { %2084 = vmatprep.subr.bf16.mxu1 %v4346_v7  ;;  %v4285_v7 = vcombine.low %v294_v59, %v310_v60  ;;  %v4318_v14 = vcombine.high %v326_v3, %v342_v5  ;;  %v503_v59 = vld [vmem:[#allocation7 + $0x6c8] sm:$0xff] }
 0x4ef   :  { %2126 = vmatpush1.bf16.msra.mxu0 %v4315_v11  ;;  %v327_v11 = vld [vmem:[#allocation7 + $0x148] sm:$0xff] }
 0x4f0   :  { %2127 = vmatprep.subr.bf16.mxu0 %v4348_v15  ;;  %v4287_v15 = vcombine.low %v295_v63, %v311_v0  ;;  %v4320_v18 = vcombine.high %v327_v11, %v343_v12  ;;  %v534_v63 = vld [vmem:[#allocation7 + $0x7c0] sm:$0xff] }
 0x4f1   :  { %2085 = vmatpush1.bf16.msra.mxu1 %v4345_v16  ;;  %v358_v16 = vld [vmem:[#allocation7 + $0x240] sm:$0xff] }
 0x4f2   :  { %2086 = vmatprep.subr.bf16.mxu1 %v4378_v19  ;;  %v4317_v19 = vcombine.low %v326_v3, %v342_v5  ;;  %v4350_v23 = vcombine.high %v358_v16, %v374_v17  ;;  %v535_v3 = vld [vmem:[#allocation7 + $0x7c8] sm:$0xff] }
 0x4f3   :  { %2128 = vmatpush1.bf16.msra.mxu0 %v4347_v21  ;;  %v359_v21 = vld [vmem:[#allocation7 + $0x248] sm:$0xff] }
 0x4f4   :  { %2129 = vmatprep.subr.bf16.mxu0 %v4380_v24  ;;  %v4319_v24 = vcombine.low %v327_v11, %v343_v12  ;;  %v4352_v27 = vcombine.high %v359_v21, %v375_v22  ;;  %v312_v11 = vld [vmem:[#allocation7 + $0xd0] sm:$0xff] }
 0x4f5   :  { %2087 = vmatpush1.bf16.msra.mxu1 %v4377_v25  ;;  %v390_v25 = vld [vmem:[#allocation7 + $0x340] sm:$0xff] }
 0x4f6   :  { %2088 = vmatprep.subr.bf16.mxu1 %v4410_v30  ;;  %v4349_v30 = vcombine.low %v358_v16, %v374_v17  ;;  %v4382_v8 = vcombine.high %v390_v25, %v406_v26  ;;  %v313_v16 = vld [vmem:[#allocation7 + $0xd8] sm:$0xff] }
 0x4f7   :  { %2130 = vmatpush1.bf16.msra.mxu0 %v4379_v31  ;;  %v391_v31 = vld [vmem:[#allocation7 + $0x348] sm:$0xff] }
 0x4f8   :  { %2131 = vmatprep.subr.bf16.mxu0 %v4412_v36  ;;  %v4351_v36 = vcombine.low %v359_v21, %v375_v22  ;;  %v4384_v39 = vcombine.high %v391_v31, %v407_v34  ;;  %v344_v21 = vld [vmem:[#allocation7 + $0x1d0] sm:$0xff] }
 0x4f9   :  { %2089 = vmatpush1.bf16.msra.mxu1 %v4409_v37  ;;  %v422_v37 = vld [vmem:[#allocation7 + $0x440] sm:$0xff] }
 0x4fa   :  { %2090 = vmatprep.subr.bf16.mxu1 %v4442_v40  ;;  %v4381_v40 = vcombine.low %v390_v25, %v406_v26  ;;  %v4414_v42 = vcombine.high %v422_v37, %v438_v38  ;;  %v345_v25 = vld [vmem:[#allocation7 + $0x1d8] sm:$0xff] }
 0x4fb   :  { %2132 = vmatpush1.bf16.msra.mxu0 %v4411_v10  ;;  %v423_v10 = vld [vmem:[#allocation7 + $0x448] sm:$0xff] }
 0x4fc   :  { %2133 = vmatprep.subr.bf16.mxu0 %v4444_v43  ;;  %v4383_v43 = vcombine.low %v391_v31, %v407_v34  ;;  %v4416_v48 = vcombine.high %v423_v10, %v439_v41  ;;  %v376_v31 = vld [vmem:[#allocation7 + $0x2d0] sm:$0xff] }
 0x4fd   :  { %2091 = vmatpush1.bf16.msra.mxu1 %v4441_v45  ;;  %v454_v45 = vld [vmem:[#allocation7 + $0x540] sm:$0xff] }
 0x4fe   :  { %2092 = vmatprep.subr.bf16.mxu1 %v4474_v49  ;;  %v4413_v49 = vcombine.low %v422_v37, %v438_v38  ;;  %v4446_v52 = vcombine.high %v454_v45, %v470_v47  ;;  %v377_v37 = vld [vmem:[#allocation7 + $0x2d8] sm:$0xff] }
 0x4ff   :  { %2134 = vmatpush1.bf16.msra.mxu0 %v4443_v50  ;;  %v455_v50 = vld [vmem:[#allocation7 + $0x548] sm:$0xff] }
 0x500   :  { %2135 = vmatprep.subr.bf16.mxu0 %v4476_v53  ;;  %v4415_v53 = vcombine.low %v423_v10, %v439_v41  ;;  %v4448_v56 = vcombine.high %v455_v50, %v471_v51  ;;  %v408_v10 = vld [vmem:[#allocation7 + $0x3d0] sm:$0xff] }
 0x501   :  { %2093 = vmatpush1.bf16.msra.mxu1 %v4473_v54  ;;  %v486_v54 = vld [vmem:[#allocation7 + $0x640] sm:$0xff] }
 0x502   :  { %2094 = vmatprep.subr.bf16.mxu1 %v4506_v57  ;;  %v4445_v57 = vcombine.low %v454_v45, %v470_v47  ;;  %v4478_v60 = vcombine.high %v486_v54, %v502_v55  ;;  %v409_v45 = vld [vmem:[#allocation7 + $0x3d8] sm:$0xff] }
 0x503   :  { %2136 = vmatpush1.bf16.msra.mxu0 %v4475_v58  ;;  %v487_v58 = vld [vmem:[#allocation7 + $0x648] sm:$0xff] }
 0x504   :  { %2137 = vmatprep.subr.bf16.mxu0 %v4508_v61  ;;  %v4447_v61 = vcombine.low %v455_v50, %v471_v51  ;;  %v4480_v0 = vcombine.high %v487_v58, %v503_v59  ;;  %v440_v50 = vld [vmem:[#allocation7 + $0x4d0] sm:$0xff] }
 0x505   :  { %2095 = vmatpush1.bf16.msra.mxu1 %v4505_v62  ;;  %v518_v62 = vld [vmem:[#allocation7 + $0x740] sm:$0xff] }
 0x506   :  { %2166 = vmatprep.subr.bf16.mxu1 %v4286_v1  ;;  %v4477_v1 = vcombine.low %v486_v54, %v502_v55  ;;  %v4510_v5 = vcombine.high %v518_v62, %v534_v63  ;;  %v441_v54 = vld [vmem:[#allocation7 + $0x4d8] sm:$0xff] }
 0x507   :  { %2138 = vmatpush1.bf16.msra.mxu0 %v4507_v2  ;;  %v519_v2 = vld [vmem:[#allocation7 + $0x748] sm:$0xff] }
 0x508   :  { %2113 = vmatmul.mubr.bf16.vlgmr.msra.gmra.mrb[12].mxu1 %v5498_v13  ;;  %2209 = vmatprep.subr.bf16.mxu0 %v4288_v6  ;;  %v4479_v6 = vcombine.low %v487_v58, %v503_v59  ;;  %v4512_v12 = vcombine.high %v519_v2, %v535_v3  ;;  %v472_v58 = vld [vmem:[#allocation7 + $0x5d0] sm:$0xff] }
 0x509   :  { %2167 = vmatpush1.bf16.msra.mxu1 %v4285_v7  ;;  %2198 = vmatprep.mubr.bf16.mxu1 %v5396_v20  ;;  %v296_v7 = vld [vmem:[#allocation7 + $0x50] sm:$0xff] }
 0x50a   :  { %2156 = vmatmul.mubr.bf16.vlgmr.msra.gmra.mrb[16].mxu0 %v5498_v13  ;;  %2168 = vmatprep.subr.bf16.mxu1 %v4318_v14  ;;  %v4509_v14 = vcombine.low %v518_v62, %v534_v63  ;;  %v4290_v17 = vcombine.high %v296_v7, %v312_v11  ;;  %v473_v62 = vld [vmem:[#allocation7 + $0x5d8] sm:$0xff] }
 0x50b   :  { %2210 = vmatpush1.bf16.msra.mxu0 %v4287_v15  ;;  %2241 = vmatprep.mubr.bf16.mxu0 %v5396_v20  ;;  %v297_v15 = vld [vmem:[#allocation7 + $0x58] sm:$0xff] }
 0x50c   :  { %2211 = vmatprep.subr.bf16.mxu0 %v4320_v18  ;;  %v4511_v18 = vcombine.low %v519_v2, %v535_v3  ;;  %v4292_v22 = vcombine.high %v297_v15, %v313_v16  ;;  %v504_v2 = vld [vmem:[#allocation7 + $0x6d0] sm:$0xff] }
 0x50d   :  { %2169 = vmatpush1.bf16.msra.mxu1 %v4317_v19  ;;  %v328_v19 = vld [vmem:[#allocation7 + $0x150] sm:$0xff] }
 0x50e   :  { %2170 = vmatprep.subr.bf16.mxu1 %v4350_v23  ;;  %v4289_v23 = vcombine.low %v296_v7, %v312_v11  ;;  %v4322_v26 = vcombine.high %v328_v19, %v344_v21  ;;  %v505_v7 = vld [vmem:[#allocation7 + $0x6d8] sm:$0xff] }
 0x50f   :  { %2212 = vmatpush1.bf16.msra.mxu0 %v4319_v24  ;;  %v329_v24 = vld [vmem:[#allocation7 + $0x158] sm:$0xff] }
 0x510   :  { %2213 = vmatprep.subr.bf16.mxu0 %v4352_v27  ;;  %v4291_v27 = vcombine.low %v297_v15, %v313_v16  ;;  %v4324_v34 = vcombine.high %v329_v24, %v345_v25  ;;  %v536_v15 = vld [vmem:[#allocation7 + $0x7d0] sm:$0xff] }
 0x511   :  { %2171 = vmatpush1.bf16.msra.mxu1 %v4349_v30  ;;  %v360_v30 = vld [vmem:[#allocation7 + $0x250] sm:$0xff] }
 0x512   :  { %2172 = vmatprep.subr.bf16.mxu1 %v4382_v8  ;;  %v4321_v8 = vcombine.low %v328_v19, %v344_v21  ;;  %v4354_v38 = vcombine.high %v360_v30, %v376_v31  ;;  %v537_v19 = vld [vmem:[#allocation7 + $0x7d8] sm:$0xff] }
 0x513   :  { %2214 = vmatpush1.bf16.msra.mxu0 %v4351_v36  ;;  %v361_v36 = vld [vmem:[#allocation7 + $0x258] sm:$0xff] }
 0x514   :  { %2215 = vmatprep.subr.bf16.mxu0 %v4384_v39  ;;  %v4323_v39 = vcombine.low %v329_v24, %v345_v25  ;;  %v4356_v41 = vcombine.high %v361_v36, %v377_v37  ;;  %v314_v24 = vld [vmem:[#allocation7 + $0xe0] sm:$0xff] }
 0x515   :  { %2173 = vmatpush1.bf16.msra.mxu1 %v4381_v40  ;;  %v392_v40 = vld [vmem:[#allocation7 + $0x350] sm:$0xff] }
 0x516   :  { %2174 = vmatprep.subr.bf16.mxu1 %v4414_v42  ;;  %v4353_v42 = vcombine.low %v360_v30, %v376_v31  ;;  %v4386_v47 = vcombine.high %v392_v40, %v408_v10  ;;  %v299_v31 = vld [vmem:[#allocation7 + $0x68] sm:$0xff] }
 0x517   :  { %2216 = vmatpush1.bf16.msra.mxu0 %v4383_v43  ;;  %v393_v43 = vld [vmem:[#allocation7 + $0x358] sm:$0xff] }
 0x518   :  { %2217 = vmatprep.subr.bf16.mxu0 %v4416_v48  ;;  %v4355_v48 = vcombine.low %v361_v36, %v377_v37  ;;  %v4388_v51 = vcombine.high %v393_v43, %v409_v45  ;;  %v330_v36 = vld [vmem:[#allocation7 + $0x160] sm:$0xff] }
 0x519   :  { %2175 = vmatpush1.bf16.msra.mxu1 %v4413_v49  ;;  %v424_v49 = vld [vmem:[#allocation7 + $0x450] sm:$0xff]  ;;  %v346_v37 = vld [vmem:[#allocation7 + $0x1e0] sm:$0xff] }
 0x51a   :  { %2176 = vmatprep.subr.bf16.mxu1 %v4446_v52  ;;  %v4385_v52 = vcombine.low %v392_v40, %v408_v10  ;;  %v4418_v55 = vcombine.high %v424_v49, %v440_v50 }
 0x51b   :  { %2218 = vmatpush1.bf16.msra.mxu0 %v4415_v53  ;;  %v425_v53 = vld [vmem:[#allocation7 + $0x458] sm:$0xff] }
 0x51c   :  { %2219 = vmatprep.subr.bf16.mxu0 %v4448_v56  ;;  %v4387_v56 = vcombine.low %v393_v43, %v409_v45  ;;  %v4420_v59 = vcombine.high %v425_v53, %v441_v54  ;;  %v4326_v43 = vcombine.high %v330_v36, %v346_v37 }
 0x51d   :  { %2177 = vmatpush1.bf16.msra.mxu1 %v4445_v57  ;;  %v456_v57 = vld [vmem:[#allocation7 + $0x550] sm:$0xff] }
 0x51e   :  { %2178 = vmatprep.subr.bf16.mxu1 %v4478_v60  ;;  %v4417_v60 = vcombine.low %v424_v49, %v440_v50  ;;  %v4450_v63 = vcombine.high %v456_v57, %v472_v58  ;;  %v378_v49 = vld [vmem:[#allocation7 + $0x2e0] sm:$0xff] }
 0x51f   :  { %2220 = vmatpush1.bf16.msra.mxu0 %v4447_v61  ;;  %v457_v61 = vld [vmem:[#allocation7 + $0x558] sm:$0xff] }
 0x520   :  { %2221 = vmatprep.subr.bf16.mxu0 %v4480_v0  ;;  %v4419_v0 = vcombine.low %v425_v53, %v441_v54  ;;  %v4452_v3 = vcombine.high %v457_v61, %v473_v62  ;;  %v363_v53 = vld [vmem:[#allocation7 + $0x268] sm:$0xff] }
 0x521   :  { %2179 = vmatpush1.bf16.msra.mxu1 %v4477_v1  ;;  %v488_v1 = vld [vmem:[#allocation7 + $0x650] sm:$0xff]  ;;  %v379_v54 = vld [vmem:[#allocation7 + $0x2e8] sm:$0xff] }
 0x522   :  { %2180 = vmatprep.subr.bf16.mxu1 %v4510_v5  ;;  %v4449_v5 = vcombine.low %v456_v57, %v472_v58  ;;  %v4482_v11 = vcombine.high %v488_v1, %v504_v2  ;;  %v394_v57 = vld [vmem:[#allocation7 + $0x360] sm:$0xff] }
 0x523   :  { %2222 = vmatpush1.bf16.msra.mxu0 %v4479_v6  ;;  %v489_v6 = vld [vmem:[#allocation7 + $0x658] sm:$0xff]  ;;  %v410_v58 = vld [vmem:[#allocation7 + $0x3e0] sm:$0xff] }
 0x524   :  { %2223 = vmatprep.subr.bf16.mxu0 %v4512_v12  ;;  %v4451_v12 = vcombine.low %v457_v61, %v473_v62  ;;  %v4484_v16 = vcombine.high %v489_v6, %v505_v7  ;;  %v4359_v61 = vcombine.low %v363_v53, %v379_v54  ;;  %v4389_v62 = vcombine.low %v394_v57, %v410_v58 }
 0x525   :  { %2181 = vmatpush1.bf16.msra.mxu1 %v4509_v14  ;;  %v520_v14 = vld [vmem:[#allocation7 + $0x750] sm:$0xff] }
 0x526   :  { %2252 = vmatprep.subr.bf16.mxu1 %v4290_v17  ;;  %v4481_v17 = vcombine.low %v488_v1, %v504_v2  ;;  %v4514_v21 = vcombine.high %v520_v14, %v536_v15 }
 0x527   :  { %2224 = vmatpush1.bf16.msra.mxu0 %v4511_v18  ;;  %v521_v18 = vld [vmem:[#allocation7 + $0x758] sm:$0xff] }
 0x528   :  { %2199 = vmatmul.mubr.bf16.vlgmr.msra.gmra.mrb[16].mxu1 %v5498_v13  ;;  %2295 = vmatprep.subr.bf16.mxu0 %v4292_v22  ;;  %v4483_v22 = vcombine.low %v489_v6, %v505_v7  ;;  %v4516_v25 = vcombine.high %v521_v18, %v537_v19 }
 0x529   :  { %2253 = vmatpush1.bf16.msra.mxu1 %v4289_v23  ;;  %2284 = vmatprep.mubr.bf16.mxu1 %v5396_v20  ;;  %v298_v23 = vld [vmem:[#allocation7 + $0x60] sm:$0xff] }
 0x52a   :  { %2242 = vmatmul.mubr.bf16.vlgmr.msra.gmra.mrb[20].mxu0 %v5498_v13  ;;  %2254 = vmatprep.subr.bf16.mxu1 %v4322_v26  ;;  %v245_v26 = vand.u32 65535, %v5547_v29  ;;  %v4294_v30 = vcombine.high %v298_v23, %v314_v24  ;;  %v4293_v10 = vcombine.low %v298_v23, %v314_v24  ;;  %v331_v29 = vld [vmem:[#allocation7 + $0x168] sm:$0xff] }
 0x52b   :  { %2296 = vmatpush1.bf16.msra.mxu0 %v4291_v27  ;;  %2327 = vmatprep.mubr.bf16.mxu0 %v5396_v20  ;;  %v4513_v27 = vcombine.low %v520_v14, %v536_v15 }
 0x52c   :  { %2297 = vmatprep.subr.bf16.mxu0 %v4324_v34  ;;  %v315_v34 = vld [vmem:[#allocation7 + $0xe8] sm:$0xff]  ;;  %v247_v40 = vcvt.s32.f32 %v245_v26  ;;  %v506_v26 = vld [vmem:[#allocation7 + $0x6e0] sm:$0xff] }
 0x52d   :  { %2255 = vmatpush1.bf16.msra.mxu1 %v4321_v8  ;;  %v4515_v8 = vcombine.low %v521_v18, %v537_v19 }
 0x52e   :  { %2256 = vmatprep.subr.bf16.mxu1 %v4354_v38  ;;  %v259_v38 = vand.u32 65535, %v5554_v33 }
 0x52f   :  { %2298 = vmatpush1.bf16.msra.mxu0 %v4323_v39 }
 0x530   :  { %2299 = vmatprep.subr.bf16.mxu0 %v4356_v41  ;;  %v4296_v41 = vcombine.high %v299_v31, %v315_v34 }
 0x531   :  { %2257 = vmatpush1.bf16.msra.mxu1 %v4353_v42  ;;  %v347_v42 = vld [vmem:[#allocation7 + $0x1e8] sm:$0xff] }
 0x532   :  { %2258 = vmatprep.subr.bf16.mxu1 %v4386_v47  ;;  %v4295_v47 = vcombine.low %v299_v31, %v315_v34  ;;  %v4328_v33 = vcombine.high %v331_v29, %v347_v42  ;;  %v491_v31 = vld [vmem:[#allocation7 + $0x668] sm:$0xff] }
 0x533   :  { %2300 = vmatpush1.bf16.msra.mxu0 %v4355_v48  ;;  %v362_v48 = vld [vmem:[#allocation7 + $0x260] sm:$0xff]  ;;  %v507_v34 = vld [vmem:[#allocation7 + $0x6e8] sm:$0xff] }
 0x534   :  { %2301 = vmatprep.subr.bf16.mxu0 %v4388_v51  ;;  %v261_v51 = vcvt.s32.f32 %v259_v38  ;;  %v538_v38 = vld [vmem:[#allocation7 + $0x7e0] sm:$0xff] }
 0x535   :  { %2259 = vmatpush1.bf16.msra.mxu1 %v4385_v52  ;;  %v4325_v52 = vcombine.low %v330_v36, %v346_v37  ;;  %v4488_v36 = vcombine.high %v491_v31, %v507_v34  ;;  %v522_v37 = vld [vmem:[#allocation7 + $0x760] sm:$0xff] }
 0x536   :  { %2260 = vmatprep.subr.bf16.mxu1 %v4418_v55 }
 0x537   :  { %2302 = vmatpush1.bf16.msra.mxu0 %v4387_v56  ;;  %v4327_v56 = vcombine.low %v331_v29, %v347_v42  ;;  %v4517_v29 = vcombine.low %v522_v37, %v538_v38  ;;  %v4518_v42 = vcombine.high %v522_v37, %v538_v38  ;;  %v461_v38 = vld [vmem:[#allocation7 + $0x578] sm:$0xff] }
 0x538   :  { %2303 = vmatprep.subr.bf16.mxu0 %v4420_v59  ;;  %v4360_v59 = vcombine.high %v363_v53, %v379_v54 }
 0x539   :  { %2261 = vmatpush1.bf16.msra.mxu1 %v4417_v60  ;;  %v4357_v60 = vcombine.low %v362_v48, %v378_v49 }
 0x53a   :  { %2262 = vmatprep.subr.bf16.mxu1 %v4450_v63  ;;  %v395_v63 = vld [vmem:[#allocation7 + $0x368] sm:$0xff] }
 0x53b   :  { %2304 = vmatpush1.bf16.msra.mxu0 %v4419_v0  ;;  %v411_v0 = vld [vmem:[#allocation7 + $0x3e8] sm:$0xff] }
 0x53c   :  { %2305 = vmatprep.subr.bf16.mxu0 %v4452_v3  ;;  %v4392_v1 = vcombine.high %v395_v63, %v411_v0  ;;  %v4391_v2 = vcombine.low %v395_v63, %v411_v0  ;;  %v426_v3 = vld [vmem:[#allocation7 + $0x460] sm:$0xff] }
 0x53d   :  { %2263 = vmatpush1.bf16.msra.mxu1 %v4449_v5  ;;  %v442_v5 = vld [vmem:[#allocation7 + $0x4e0] sm:$0xff] }
 0x53e   :  { %2264 = vmatprep.subr.bf16.mxu1 %v4482_v11  ;;  %v4422_v6 = vcombine.high %v426_v3, %v442_v5  ;;  %v4421_v7 = vcombine.low %v426_v3, %v442_v5  ;;  %v427_v11 = vld [vmem:[#allocation7 + $0x468] sm:$0xff] }
 0x53f   :  { %2306 = vmatpush1.bf16.msra.mxu0 %v4451_v12  ;;  %v443_v12 = vld [vmem:[#allocation7 + $0x4e8] sm:$0xff] }
 0x540   :  { %2307 = vmatprep.subr.bf16.mxu0 %v4484_v16  ;;  %v4424_v14 = vcombine.high %v427_v11, %v443_v12  ;;  %v4423_v15 = vcombine.low %v427_v11, %v443_v12  ;;  %v458_v16 = vld [vmem:[#allocation7 + $0x560] sm:$0xff] }
 0x541   :  { %2265 = vmatpush1.bf16.msra.mxu1 %v4481_v17  ;;  %v474_v17 = vld [vmem:[#allocation7 + $0x5e0] sm:$0xff] }
 0x542   :  { %2266 = vmatprep.subr.bf16.mxu1 %v4514_v21  ;;  %v4454_v18 = vcombine.high %v458_v16, %v474_v17  ;;  %v4453_v19 = vcombine.low %v458_v16, %v474_v17  ;;  %v459_v21 = vld [vmem:[#allocation7 + $0x568] sm:$0xff] }
 0x543   :  { %2308 = vmatpush1.bf16.msra.mxu0 %v4483_v22  ;;  %v475_v22 = vld [vmem:[#allocation7 + $0x5e8] sm:$0xff] }
 0x544   :  { %2309 = vmatprep.subr.bf16.mxu0 %v4516_v25  ;;  %v4455_v23 = vcombine.low %v459_v21, %v475_v22  ;;  %v4456_v24 = vcombine.high %v459_v21, %v475_v22  ;;  %v490_v25 = vld [vmem:[#allocation7 + $0x660] sm:$0xff] }
 0x545   :  { %2267 = vmatpush1.bf16.msra.mxu1 %v4513_v27  ;;  %v4485_v27 = vcombine.low %v490_v25, %v506_v26 }
 0x546   :  { %2338 = vmatprep.subr.bf16.mxu1 %v4294_v30  ;;  %v4486_v30 = vcombine.high %v490_v25, %v506_v26 }
 0x547   :  { %2310 = vmatpush1.bf16.msra.mxu0 %v4515_v8  ;;  %v4487_v8 = vcombine.low %v491_v31, %v507_v34  ;;  %v460_v34 = vld [vmem:[#allocation7 + $0x570] sm:$0xff] }
 0x548   :  { %2285 = vmatmul.mubr.bf16.vlgmr.msra.gmra.mrb[20].mxu1 %v5498_v13  ;;  %2381 = vmatprep.subr.bf16.mxu0 %v4296_v41  ;;  %v5591_v41 = vpop.f32.mrb[4].mxu0 }
 0x549   :  { %2339 = vmatpush1.bf16.msra.mxu1 %v4293_v10  ;;  %2370 = vmatprep.mubr.bf16.mxu1 %v5396_v20  ;;  %v5589_v10 = vpop.f32.mrb[0].mxu1  ;;  %v5597_v54 = vpop.f32.mrb[5].mxu0  ;;  %v4527_v4 = vmul.f32 -1.442695, %v5591_v41 }
 0x54a   :  { %2328 = vmatmul.mubr.bf16.vlgmr.msra.gmra.mrb[24].mxu0 %v5498_v13  ;;  %2340 = vmatprep.subr.bf16.mxu1 %v4326_v43  ;;  %v539_v43 = vld [vmem:[#allocation7 + $0x7e8] sm:$0xff] }
 0x54b   :  { %2382 = vmatpush1.bf16.msra.mxu0 %v4295_v47  ;;  %2413 = vmatprep.mubr.bf16.mxu0 %v5396_v20  ;;  %v316_v47 = vld [vmem:[#allocation7 + $0xf0] sm:$0xff] }
 0x54c   :  { %2383 = vmatprep.subr.bf16.mxu0 %v4328_v33 }
 0x54d   :  { %2341 = vmatpush1.bf16.msra.mxu1 %v4325_v52  ;;  %v317_v52 = vld [vmem:[#allocation7 + $0xf8] sm:$0xff] }
 0x54f   :  { %2384 = vmatpush1.bf16.msra.mxu0 %v4327_v56  ;;  %v348_v56 = vld [vmem:[#allocation7 + $0x1f0] sm:$0xff] }
 0x550   :  { %2385 = vmatprep.subr.bf16.mxu0 %v4360_v59  ;;  %v5601_v59 = vpop.f32.mrb[6].mxu0 }
 0x553   :  { %2386 = vmatpush1.bf16.msra.mxu0 %v4359_v61  ;;  %v349_v61 = vld [vmem:[#allocation7 + $0x1f8] sm:$0xff] }
 0x554   :  { %2387 = vmatprep.subr.bf16.mxu0 %v4392_v1  ;;  %v364_v1 = vld [vmem:[#allocation7 + $0x270] sm:$0xff] }
 0x555   :  { %v5577_v39 = vpop.xlane.xlu0 %249 }
 0x556   :  { %vm251_vm9 = vcmp.eq.f32.partialorder %v5551_v32, %v5577_v39  ;;  %v4358_v32 = vcombine.high %v362_v48, %v378_v49  ;;  %v5593_v48 = vpop.f32.mrb[1].mxu1 }
 0x557   :  { %v252_v45 = vsel %vm251_vm9, %v247_v40, inf  ;;  %2388 = vmatpush1.bf16.msra.mxu0 %v4391_v2  ;;  %v523_v40 = vld [vmem:[#allocation7 + $0x768] sm:$0xff]  ;;  %v5595_v53 = vpop.f32.mrb[2].mxu1  ;;  %v380_v2 = vld [vmem:[#allocation7 + $0x2f0] sm:$0xff] }
 0x558   :  { %253 = vmin.xlane.f32.xlu0 %v252_v45  ;;  %2342 = vmatprep.subr.bf16.mxu1 %v4358_v32  ;;  %v300_v45 = vld [vmem:[#allocation7 + $0x70] sm:$0xff]  ;;  %v4520_v49 = vcombine.high %v523_v40, %v539_v43  ;;  %v4519_v32 = vcombine.low %v523_v40, %v539_v43  ;;  %v4362_v11 = vcombine.high %v364_v1, %v380_v2  ;;  %v477_v40 = vld [vmem:[#allocation7 + $0x5f8] sm:$0xff] }
 0x559   :  { %v5582_v50 = vpop.xlane.xlu1 %263  ;;  %2343 = vmatpush1.bf16.msra.mxu1 %v4357_v60  ;;  %2389 = vmatprep.subr.bf16.mxu0 %v4424_v14  ;;  %v4298_v33 = vcombine.high %v300_v45, %v316_v47  ;;  %v4297_v60 = vcombine.low %v300_v45, %v316_v47  ;;  %v396_v14 = vld [vmem:[#allocation7 + $0x370] sm:$0xff]  ;;  %v4361_v17 = vcombine.low %v364_v1, %v380_v2 }
 0x55a   :  { %vm265_vm10 = vcmp.eq.f32.partialorder %v5558_v35, %v5582_v50  ;;  %v4390_v35 = vcombine.high %v394_v57, %v410_v58  ;;  %v5599_v57 = vpop.f32.mrb[3].mxu1  ;;  %v492_v43 = vld [vmem:[#allocation7 + $0x670] sm:$0xff]  ;;  %v4460_v47 = vcombine.high %v461_v38, %v477_v40 }
 0x55b   :  { %v266_v55 = vsel %vm265_vm10, %v261_v51, inf  ;;  %2390 = vmatpush1.bf16.msra.mxu0 %v4423_v15  ;;  %v301_v51 = vld [vmem:[#allocation7 + $0x78] sm:$0xff]  ;;  %v412_v15 = vld [vmem:[#allocation7 + $0x3f0] sm:$0xff] }
 0x55c   :  { %267 = vmin.xlane.f32.xlu1 %v266_v55  ;;  %2344 = vmatprep.subr.bf16.mxu1 %v4390_v35  ;;  %v332_v55 = vld [vmem:[#allocation7 + $0x170] sm:$0xff]  ;;  %v4300_v58 = vcombine.high %v301_v51, %v317_v52  ;;  %v333_v35 = vld [vmem:[#allocation7 + $0x178] sm:$0xff]  ;;  %v4299_v0 = vcombine.low %v301_v51, %v317_v52  ;;  %v4394_v21 = vcombine.high %v396_v14, %v412_v15 }
 0x55d   :  { %2345 = vmatpush1.bf16.msra.mxu1 %v4389_v62  ;;  %2391 = vmatprep.subr.bf16.mxu0 %v4456_v24  ;;  %v5603_v62 = vpop.f32.mrb[7].mxu0  ;;  %v4330_v63 = vcombine.high %v332_v55, %v348_v56  ;;  %v4332_v3 = vcombine.high %v333_v35, %v349_v61  ;;  %v4329_v5 = vcombine.low %v332_v55, %v348_v56  ;;  %v444_v24 = vld [vmem:[#allocation7 + $0x4f0] sm:$0xff]  ;;  %v509_v51 = vld [vmem:[#allocation7 + $0x6f8] sm:$0xff] }
 0x55e   :  { %2346 = vmatprep.subr.bf16.mxu1 %v4422_v6  ;;  %v365_v6 = vld [vmem:[#allocation7 + $0x278] sm:$0xff]  ;;  %v4331_v12 = vcombine.low %v333_v35, %v349_v61  ;;  %v4393_v26 = vcombine.low %v396_v14, %v412_v15  ;;  %v508_v45 = vld [vmem:[#allocation7 + $0x6f0] sm:$0xff]  ;;  %v233_v15 = vsel %vm231_vm5, %v5503_v44, 0.0  ;;  %v4544_v9 = vmul.f32 -1.442695, %v5603_v62 }
 0x55f   :  { %2392 = vmatpush1.bf16.msra.mxu0 %v4455_v23  ;;  %v428_v23 = vld [vmem:[#allocation7 + $0x470] sm:$0xff]  ;;  %v4490_v52 = vcombine.high %v492_v43, %v508_v45  ;;  %v525_v35 = vld [vmem:[#allocation7 + $0x778] sm:$0xff] }
 0x560   :  { %2393 = vmatprep.subr.bf16.mxu0 %v4488_v36  ;;  %v4425_v37 = vcombine.low %v428_v23, %v444_v24  ;;  %v524_v55 = vld [vmem:[#allocation7 + $0x770] sm:$0xff]  ;;  %v541_v61 = vld [vmem:[#allocation7 + $0x7f8] sm:$0xff] }
 0x561   :  { %2347 = vmatpush1.bf16.msra.mxu1 %v4421_v7  ;;  %v381_v7 = vld [vmem:[#allocation7 + $0x2f8] sm:$0xff]  ;;  %v540_v56 = vld [vmem:[#allocation7 + $0x7f0] sm:$0xff]  ;;  %v4524_v1 = vcombine.high %v525_v35, %v541_v61 }
 0x562   :  { %2348 = vmatprep.subr.bf16.mxu1 %v4454_v18  ;;  %v4364_v16 = vcombine.high %v365_v6, %v381_v7  ;;  %v397_v18 = vld [vmem:[#allocation7 + $0x378] sm:$0xff]  ;;  %v4363_v22 = vcombine.low %v365_v6, %v381_v7  ;;  %v4521_v2 = vcombine.low %v524_v55, %v540_v56 }
 0x563   :  { %2394 = vmatpush1.bf16.msra.mxu0 %v4487_v8  ;;  %v476_v8 = vld [vmem:[#allocation7 + $0x5f0] sm:$0xff] }
 0x564   :  { %2395 = vmatprep.subr.bf16.mxu0 %v4520_v49  ;;  %v4457_v49 = vcombine.low %v460_v34, %v476_v8 }
 0x565   :  { %2349 = vmatpush1.bf16.msra.mxu1 %v4453_v19  ;;  %v413_v19 = vld [vmem:[#allocation7 + $0x3f8] sm:$0xff] }
 0x566   :  { %2350 = vmatprep.subr.bf16.mxu1 %v4486_v30  ;;  %v4396_v25 = vcombine.high %v397_v18, %v413_v19  ;;  %v445_v30 = vld [vmem:[#allocation7 + $0x4f8] sm:$0xff]  ;;  %v4395_v31 = vcombine.low %v397_v18, %v413_v19  ;;  %v4526_v19 = vmul.f32 -1.442695, %v5593_v48 }
 0x567   :  { %2396 = vmatpush1.bf16.msra.mxu0 %v4519_v32  ;;  %v4459_v32 = vcombine.low %v461_v38, %v477_v40 }
 0x568   :  { %2467 = vmatprep.subr.bf16.mxu0 %v4300_v58 }
 0x569   :  { %2351 = vmatpush1.bf16.msra.mxu1 %v4485_v27  ;;  %v429_v27 = vld [vmem:[#allocation7 + $0x478] sm:$0xff] }
 0x56a   :  { %2352 = vmatprep.subr.bf16.mxu1 %v4518_v42  ;;  %2414 = vmatmul.mubr.bf16.vlgmr.msra.gmra.mrb[28].mxu0 %v5498_v13  ;;  %v4428_v36 = vcombine.high %v429_v27, %v445_v30  ;;  %v4427_v42 = vcombine.low %v429_v27, %v445_v30 }
 0x56b   :  { %2468 = vmatpush1.bf16.msra.mxu0 %v4299_v0  ;;  %2499 = vmatprep.mubr.bf16.mxu0 %v5396_v20 }
 0x56c   :  { %2469 = vmatprep.subr.bf16.mxu0 %v4332_v3  ;;  %v4523_v3 = vcombine.low %v525_v35, %v541_v61 }
 0x56d   :  { %2353 = vmatpush1.bf16.msra.mxu1 %v4517_v29  ;;  %v4458_v29 = vcombine.high %v460_v34, %v476_v8 }
 0x56e   :  { %2424 = vmatprep.subr.bf16.mxu1 %v4298_v33  ;;  %v493_v33 = vld [vmem:[#allocation7 + $0x678] sm:$0xff] }
 0x56f   :  { %2470 = vmatpush1.bf16.msra.mxu0 %v4331_v12  ;;  %v4492_v58 = vcombine.high %v493_v33, %v509_v51  ;;  %v4491_v0 = vcombine.low %v493_v33, %v509_v51 }
 0x570   :  { %2371 = vmatmul.mubr.bf16.vlgmr.msra.gmra.mrb[24].mxu1 %v5498_v13  ;;  %2471 = vmatprep.subr.bf16.mxu0 %v4364_v16 }
 0x571   :  { %2425 = vmatpush1.bf16.msra.mxu1 %v4297_v60  ;;  %2456 = vmatprep.mubr.bf16.mxu1 %v5396_v20  ;;  %v4426_v20 = vcombine.high %v428_v23, %v444_v24  ;;  %v4489_v60 = vcombine.low %v492_v43, %v508_v45  ;;  %v4528_v24 = vmul.f32 -1.442695, %v5597_v54 }
 0x572   :  { %2426 = vmatprep.subr.bf16.mxu1 %v4330_v63  ;;  %v4522_v63 = vcombine.high %v524_v55, %v540_v56 }
 0x573   :  { %2472 = vmatpush1.bf16.msra.mxu0 %v4363_v22  ;;  %v234_v22 = vsel %vm232_vm6, %v5506_v46, 0.0 }
 0x574   :  { %2473 = vmatprep.subr.bf16.mxu0 %v4396_v25  ;;  %v4543_v25 = vmul.f32 -1.442695, %v5601_v59 }
 0x575   :  { %2427 = vmatpush1.bf16.msra.mxu1 %v4329_v5  ;;  %v256_v5 = vcvt.f32.s32 %v5577_v39 }
 0x576   :  { %2428 = vmatprep.subr.bf16.mxu1 %v4362_v11  ;;  %v270_v11 = vcvt.f32.s32 %v5582_v50 }
 0x577   :  { %2474 = vmatpush1.bf16.msra.mxu0 %v4395_v31  ;;  %v257_v7 = vshll.u32 %v256_v5, 16 }
 0x578   :  { %2475 = vmatprep.subr.bf16.mxu0 %v4428_v36 }
 0x579   :  { %2429 = vmatpush1.bf16.msra.mxu1 %v4361_v17  ;;  %v271_v17 = vshll.u32 %v270_v11, 16 }
 0x57a   :  { %2430 = vmatprep.subr.bf16.mxu1 %v4394_v21  ;;  %v4541_v21 = vmul.f32 -1.442695, %v5595_v53 }
 0x57b   :  { %2476 = vmatpush1.bf16.msra.mxu0 %v4427_v42 }
 0x57c   :  { %2477 = vmatprep.subr.bf16.mxu0 %v4460_v47 }
 0x57d   :  { %2431 = vmatpush1.bf16.msra.mxu1 %v4393_v26 }
 0x57e   :  { %2432 = vmatprep.subr.bf16.mxu1 %v4426_v20 }
 0x57f   :  { %2478 = vmatpush1.bf16.msra.mxu0 %v4459_v32 }
 0x580   :  { %2479 = vmatprep.subr.bf16.mxu0 %v4492_v58 }
 0x581   :  { %2433 = vmatpush1.bf16.msra.mxu1 %v4425_v37 }
 0x582   :  { %2434 = vmatprep.subr.bf16.mxu1 %v4458_v29  ;;  %v5639_v29 = vpop.f32.mrb[4].mxu1 }
 0x583   :  { %2480 = vmatpush1.bf16.msra.mxu0 %v4491_v0  ;;  %v5641_v43 = vpop.f32.mrb[5].mxu1 }
 0x584   :  { %2481 = vmatprep.subr.bf16.mxu0 %v4524_v1  ;;  %v5643_v47 = vpop.f32.mrb[6].mxu1 }
 0x585   :  { %2435 = vmatpush1.bf16.msra.mxu1 %v4457_v49  ;;  %v5647_v51 = vpop.f32.mrb[7].mxu1  ;;  %v4545_v11 = vmul.f32 -1.442695, %v5643_v47 }
 0x586   :  { %2436 = vmatprep.subr.bf16.mxu1 %v4490_v52 }
 0x587   :  { %2482 = vmatpush1.bf16.msra.mxu0 %v4523_v3 }
 0x589   :  { %2437 = vmatpush1.bf16.msra.mxu1 %v4489_v60 }
 0x58a   :  { %2438 = vmatprep.subr.bf16.mxu1 %v4522_v63  ;;  %2500 = vmatmul.mubr.bf16.vlgmr.msra.gmra.mrb[32].mxu0 %v5498_v13 }
 0x58d   :  { %2439 = vmatpush1.bf16.msra.mxu1 %v4521_v2 }
 0x590   :  { %2457 = vmatmul.mubr.bf16.vlgmr.msra.gmra.mrb[28].mxu1 %v5498_v13  ;;  %v4525_v13 = vmul.f32 -1.442695, %v5589_v10 }
 0x592   :  { %5113 = vpow2.f32 %v4525_v13 }
 0x593   :  { %5115 = vpow2.f32 %v4526_v19 }
 0x594   :  { %5117 = vpow2.f32 %v4541_v21 }
 0x595   :  { %5119 = vpow2.f32 %v4527_v4 }
 0x59c   :  { %v5645_v49 = vpop.f32.mrb[8].mxu0 }
 0x59d   :  { %v5649_v52 = vpop.f32.mrb[9].mxu0 }
 0x59e   :  { %v5651_v32 = vpop.f32.mrb[10].mxu0 }
 0x59f   :  { %v5655_v56 = vpop.f32.mrb[11].mxu0  ;;  %v4547_v19 = vmul.f32 -1.442695, %v5651_v32 }
 0x5bb   :  { %v5653_v55 = vpop.f32.mrb[8].mxu1 }
 0x5bc   :  { %v5657_v58 = vpop.f32.mrb[9].mxu1 }
 0x5bd   :  { %v5659_v60 = vpop.f32.mrb[10].mxu1  ;;  %v5661_v35 = vpop.f32.mrb[12].mxu0 }
 0x5be   :  { %v5663_v61 = vpop.f32.mrb[11].mxu1  ;;  %v5665_v63 = vpop.f32.mrb[13].mxu0 }
 0x5bf   :  { %v5667_v0 = vpop.f32.mrb[14].mxu0 }
 0x5c0   :  { %v5671_v2 = vpop.f32.mrb[15].mxu0 }
 0x5db   :  { %v5669_v1 = vpop.f32.mrb[12].mxu1 }
 0x5dc   :  { %v5673_v3 = vpop.f32.mrb[13].mxu1 }
 0x5e5   :  { %v254_v6 = vpop.xlane.xlu0 %253 }
 0x5e6   :  { %v255_v12 = vcvt.f32.s32 %v254_v6  ;;  %v4529_v6 = vmul.f32 -1.442695, %v5639_v29 }
 0x5e8   :  { %v258_v14 = vadd.s32 %v257_v7, %v255_v12  ;;  %v4530_v7 = vmul.f32 -1.442695, %v5641_v43 }
 0x5e9   :  { %v268_v16 = vpop.xlane.xlu1 %267 }
 0x5ea   :  { %v269_v18 = vcvt.f32.s32 %v268_v16  ;;  %vm273_vm11 = vcmp.eq.s32.totalorder %v5500_v28, %v258_v14  ;;  %v4531_v14 = vmul.f32 -1.442695, %v5645_v49  ;;  %v4546_v16 = vmul.f32 -1.442695, %v5647_v51 }
 0x5eb   :  { %v5620_v39 = vsel %vm273_vm11, %v5503_v44, %v233_v15  ;;  %v4542_v44 = vmul.f32 -1.442695, %v5599_v57 }
 0x5ec   :  { %v272_v50 = vadd.s32 %v271_v17, %v269_v18  ;;  %277 = vadd.xlane.f32.xlu0 %v5620_v39  ;;  %v4532_v18 = vmul.f32 -1.442695, %v5649_v52 }
 0x5ed   :  { %5121 = vpow2.f32 %v4542_v44  ;;  %v4548_v44 = vmul.f32 -1.442695, %v5655_v56 }
 0x5ee   :  { %vm274_vm12 = vcmp.eq.s32.totalorder %v5500_v28, %v272_v50  ;;  %5123 = vpow2.f32 %v4528_v24  ;;  %v5114_v28 = vpop.eup %5113  ;;  %v5685_v24 = vpop.f32.mrb[14].mxu1 }
 0x5ef   :  { %v5633_v23 = vsel %vm274_vm12, %v5506_v46, %v234_v22  ;;  %5125 = vpow2.f32 %v4543_v25  ;;  %v5116_v26 = vpop.eup %5115  ;;  %v2606_v30 = vadd.f32 1.0, %v5114_v28  ;;  %v5687_v25 = vpop.f32.mrb[16].mxu0 }
 0x5f0   :  { %279 = vadd.xlane.f32.xlu1 %v5633_v23  ;;  %5127 = vpow2.f32 %v4544_v9  ;;  %v5118_v27 = vpop.eup %5117  ;;  %v2607_v31 = vadd.f32 1.0, %v5116_v26 }
 0x5f1   :  { %v5120_v46 = vpop.eup %5119  ;;  %v2622_v8 = vadd.f32 1.0, %v5118_v27  ;;  %5129 = vrcp.f32 %v2606_v30  ;;  %v5691_v27 = vpop.f32.mrb[15].mxu1 }
 0x5f2   :  { %v2608_v37 = vadd.f32 1.0, %v5120_v46  ;;  %5131 = vrcp.f32 %v2607_v31 }
 0x5f3   :  { %5133 = vrcp.f32 %v2622_v8 }
 0x5f4   :  { %5135 = vrcp.f32 %v2608_v37 }
 0x5f7   :  { %v5122_v20 = vpop.eup %5121 }
 0x5f8   :  { %v5124_v34 = vpop.eup %5123  ;;  %v2623_v40 = vadd.f32 1.0, %v5122_v20 }
 0x5f9   :  { %v5126_v36 = vpop.eup %5125  ;;  %v2609_v42 = vadd.f32 1.0, %v5124_v34 }
 0x5fa   :  { %v5128_v38 = vpop.eup %5127  ;;  %v2624_v45 = vadd.f32 1.0, %v5126_v36  ;;  %5137 = vrcp.f32 %v2623_v40 }
 0x5fb   :  { %v2625_v33 = vadd.f32 1.0, %v5128_v38  ;;  %5139 = vrcp.f32 %v2609_v42  ;;  %v5130_v5 = vpop.eup %5129  ;;  %v2200_v20 = vpop.f32.mrb[16].mxu1 }
 0x5fc   :  { %5141 = vrcp.f32 %v2624_v45  ;;  %v5132_v12 = vpop.eup %5131  ;;  %v2702_v21 = vmul.f32 %v5130_v5, %v5589_v10  ;;  %v5693_v10 = vpop.f32.mrb[17].mxu0 }
 0x5fd   :  { %5143 = vrcp.f32 %v2625_v33  ;;  %v5134_v15 = vpop.eup %5133  ;;  %v2703_v22 = vmul.f32 %v5132_v12, %v5593_v48  ;;  %v5697_v30 = vpop.f32.mrb[18].mxu0 }
 0x5fe   :  { %5145 = vpow2.f32 %v4529_v6  ;;  %v5136_v17 = vpop.eup %5135  ;;  %v2718_v28 = vmul.f32 %v5134_v15, %v5595_v53  ;;  %v5700_v34 = vmul.f32 %v2702_v21, %v2200_v20  ;;  %v5702_v53 = vpop.f32.mrb[19].mxu0  ;;  %v4534_v20 = vmul.f32 -1.442695, %v5657_v58 }
 0x5ff   :  { %5147 = vpow2.f32 %v4530_v7  ;;  %v2704_v26 = vmul.f32 %v5136_v17, %v5591_v41  ;;  %v2202_v41 = vpop.f32.mrb[17].mxu1 }
 0x600   :  { %5149 = vpow2.f32 %v4545_v11  ;;  %v5705_v36 = vmul.f32 %v2703_v22, %v2202_v41  ;;  %v2204_v37 = vpop.f32.mrb[18].mxu1  ;;  %v4549_v41 = vmul.f32 -1.442695, %v5659_v60 }
 0x601   :  { %5151 = vpow2.f32 %v4531_v14  ;;  %v5707_v38 = vmul.f32 %v2718_v28, %v2204_v37  ;;  %v2206_v40 = vpop.f32.mrb[19].mxu1  ;;  %v4535_v37 = vmul.f32 -1.442695, %v5661_v35 }
 0x602   :  { %5153 = vpow2.f32 %v4546_v16 }
 0x603   :  { %5155 = vpow2.f32 %v4532_v18 }
 0x604   :  { %v5138_v13 = vpop.eup %5137  ;;  %5157 = vpow2.f32 %v4547_v19 }
 0x605   :  { %v5140_v50 = vpop.eup %5139  ;;  %v2719_v46 = vmul.f32 %v5138_v13, %v5599_v57  ;;  %5159 = vpow2.f32 %v4548_v44  ;;  %v2243_v57 = vpop.f32.mrb[20].mxu0 }
 0x606   :  { %v5142_v4 = vpop.eup %5141  ;;  %v2705_v48 = vmul.f32 %v5140_v50, %v5597_v54  ;;  %v5709_v54 = vmul.f32 %v2704_v26, %v2243_v57  ;;  %v2245_v42 = vpop.f32.mrb[21].mxu0 }
 0x607   :  { %v5144_v9 = vpop.eup %5143  ;;  %v2720_v31 = vmul.f32 %v5142_v4, %v5601_v59  ;;  %v5711_v59 = vmul.f32 %v2719_v46, %v2206_v40  ;;  %v2247_v5 = vpop.f32.mrb[22].mxu0  ;;  %v4533_v46 = vmul.f32 -1.442695, %v5653_v55 }
 0x608   :  { %v2721_v8 = vmul.f32 %v5144_v9, %v5603_v62  ;;  %v5146_v45 = vpop.eup %5145  ;;  %v5713_v33 = vmul.f32 %v2705_v48, %v2245_v42  ;;  %v2249_v11 = vpop.f32.mrb[23].mxu0  ;;  %v4550_v42 = vmul.f32 -1.442695, %v5663_v61 }
 0x609   :  { %v5148_v6 = vpop.eup %5147  ;;  %v2610_v7 = vadd.f32 1.0, %v5146_v45  ;;  %v5715_v62 = vmul.f32 %v2720_v31, %v2247_v5 }
 0x60a   :  { %v5150_v12 = vpop.eup %5149  ;;  %v2611_v14 = vadd.f32 1.0, %v5148_v6  ;;  %v5717_v15 = vmul.f32 %v2721_v8, %v2249_v11  ;;  %v4536_v6 = vmul.f32 -1.442695, %v5665_v63 }
 0x60b   :  { %v5152_v16 = vpop.eup %5151  ;;  %v2626_v17 = vadd.f32 1.0, %v5150_v12  ;;  %5161 = vrcp.f32 %v2610_v7 }
 0x60c   :  { %v5154_v18 = vpop.eup %5153  ;;  %v2612_v13 = vadd.f32 1.0, %v5152_v16  ;;  %5163 = vrcp.f32 %v2611_v14  ;;  %v4551_v14 = vmul.f32 -1.442695, %v5667_v0 }
 0x60d   :  { %v5156_v19 = vpop.eup %5155  ;;  %v2627_v50 = vadd.f32 1.0, %v5154_v18  ;;  %5165 = vrcp.f32 %v2626_v17  ;;  %v4552_v17 = vmul.f32 -1.442695, %v5671_v2 }
 0x60e   :  { %v5158_v21 = vpop.eup %5157  ;;  %v2613_v4 = vadd.f32 1.0, %v5156_v19  ;;  %5167 = vrcp.f32 %v2612_v13 }
 0x60f   :  { %v2628_v22 = vadd.f32 1.0, %v5158_v21  ;;  %v5160_v44 = vpop.eup %5159  ;;  %5169 = vrcp.f32 %v2627_v50 }
 0x610   :  { %5171 = vrcp.f32 %v2613_v4  ;;  %v2629_v9 = vadd.f32 1.0, %v5160_v44 }
 0x611   :  { %5173 = vrcp.f32 %v2628_v22 }
 0x612   :  { %5175 = vrcp.f32 %v2629_v9 }
 0x613   :  { %5177 = vpow2.f32 %v4533_v46 }
 0x614   :  { %5179 = vpow2.f32 %v4534_v20 }
 0x615   :  { %v5162_v28 = vpop.eup %5161  ;;  %5181 = vpow2.f32 %v4549_v41 }
 0x616   :  { %v5164_v26 = vpop.eup %5163  ;;  %v2706_v40 = vmul.f32 %v5162_v28, %v5639_v29  ;;  %5183 = vpow2.f32 %v4535_v37 }
 0x617   :  { %v5166_v48 = vpop.eup %5165  ;;  %v2707_v5 = vmul.f32 %v5164_v26, %v5641_v43  ;;  %5185 = vpow2.f32 %v4550_v42 }
 0x618   :  { %v5168_v31 = vpop.eup %5167  ;;  %v2722_v11 = vmul.f32 %v5166_v48, %v5643_v47  ;;  %5187 = vpow2.f32 %v4536_v6 }
 0x619   :  { %v5170_v8 = vpop.eup %5169  ;;  %v2708_v12 = vmul.f32 %v5168_v31, %v5645_v49  ;;  %5189 = vpow2.f32 %v4551_v14  ;;  %v4977_v14 = vld [vmem:[#allocation8 + $0x40] sm:$0xff]  }
 0x61a   :  { %v5172_v57 = vpop.eup %5171  ;;  %v2723_v16 = vmul.f32 %v5170_v8, %v5647_v51  ;;  %5191 = vpow2.f32 %v4552_v17  ;;  %4703 = vmatprep.subr.bf16.mxu1 %v4977_v14  ;;  %v4983_v17 = vld [vmem:[#allocation8 + $0xc0] sm:$0xff]  }
 0x61b   :  { %v5174_v45 = vpop.eup %5173  ;;  %v2709_v29 = vmul.f32 %v5172_v57, %v5649_v52  ;;  %v2286_v18 = vpop.f32.mrb[20].mxu1  ;;  %4725 = vmatprep.subr.bf16.mxu0 %v4983_v17  ;;  %v4989_v17 = vld [vmem:[#allocation8 + $0x60] sm:$0xff]  }
 0x61c   :  { %v5176_v7 = vpop.eup %5175  ;;  %v2724_v43 = vmul.f32 %v5174_v45, %v5651_v32  ;;  %v5734_v13 = vmul.f32 %v2706_v40, %v2286_v18  ;;  %v2288_v19 = vpop.f32.mrb[21].mxu1  ;;  %v4984_v18 = vld [vmem:[#allocation8 + $0x80] sm:$0xff]  }
 0x61d   :  { %v2725_v47 = vmul.f32 %v5176_v7, %v5655_v56  ;;  %v5737_v49 = vmul.f32 %v2707_v5, %v2288_v19  ;;  %v2290_v50 = vpop.f32.mrb[22].mxu1  ;;  %v2329_v21 = vpop.f32.mrb[24].mxu0  ;;  %v4987_v19 = vld [vmem:[#allocation8 + $0xc8] sm:$0xff]   ;;  %4726 = vmatpush3.bf16.msra.mxu0 %v4984_v18 }
 0x61e   :  { %v5739_v51 = vmul.f32 %v2722_v11, %v2290_v50  ;;  %v5741_v52 = vmul.f32 %v2708_v12, %v2329_v21  ;;  %v2292_v4 = vpop.f32.mrb[23].mxu1  ;;  %v2331_v22 = vpop.f32.mrb[25].mxu0  ;;  %v4988_v21 = vld [vmem:[#allocation8 + $0x88] sm:$0xff]   ;;  %4727 = vmatprep.subr.bf16.mxu0 %v4987_v19 }
 0x61f   :  { %v5743_v32 = vmul.f32 %v2723_v16, %v2292_v4  ;;  %v5745_v44 = vmul.f32 %v2709_v29, %v2331_v22  ;;  %v2333_v9 = vpop.f32.mrb[26].mxu0  ;;  %v5178_v46 = vpop.eup %5177  ;;  %v4978_v16 = vld [vmem:[#allocation8] sm:$0xff]   ;;  %v4979_v29 = vld [vmem:[#allocation8 + $0x48] sm:$0xff]   ;;  %v4537_v22 = vmul.f32 -1.442695, %v5669_v1 }
 0x620   :  { %v5747_v28 = vmul.f32 %v2724_v43, %v2333_v9  ;;  %v2335_v56 = vpop.f32.mrb[27].mxu0  ;;  %v5180_v48 = vpop.eup %5179  ;;  %v2614_v41 = vadd.f32 1.0, %v5178_v46  ;;  %4704 = vmatpush3.bf16.msra.mxu1 %v4978_v16  ;;  %v4980_v43 = vld [vmem:[#allocation8 + $0x8] sm:$0xff]   ;;  %v4991_v9 = vld [vmem:[#allocation8 + $0xd0] sm:$0xff]   ;;  %v4538_v46 = vmul.f32 -1.442695, %v5673_v3 }
 0x621   :  { %v5749_v26 = vmul.f32 %v2725_v47, %v2335_v56  ;;  %v5182_v20 = vpop.eup %5181  ;;  %v2615_v37 = vadd.f32 1.0, %v5180_v48  ;;  %4705 = vmatprep.subr.bf16.mxu1 %v4979_v29  ;;  %v4981_v47 = vld [vmem:[#allocation8 + $0x50] sm:$0xff]   ;;  %4728 = vmatpush3.bf16.msra.mxu0 %v4988_v21 }
 0x622   :  { %v5184_v31 = vpop.eup %5183  ;;  %v2630_v40 = vadd.f32 1.0, %v5182_v20  ;;  %5193 = vrcp.f32 %v2614_v41  ;;  %v4982_v48 = vld [vmem:[#allocation8 + $0x10] sm:$0xff]   ;;  %v4985_v41 = vld [vmem:[#allocation8 + $0x58] sm:$0xff]   ;;  %4729 = vmatprep.subr.bf16.mxu0 %v4991_v9 }
 0x623   :  { %v5186_v8 = vpop.eup %5185  ;;  %v2616_v45 = vadd.f32 1.0, %v5184_v31  ;;  %5195 = vrcp.f32 %v2615_v37  ;;  %v4553_v31 = vmul.f32 -1.442695, %v5685_v24  ;;  %v4539_v37 = vmul.f32 -1.442695, %v5687_v25 }
 0x624   :  { %v5188_v57 = vpop.eup %5187  ;;  %v2631_v6 = vadd.f32 1.0, %v5186_v8  ;;  %5197 = vrcp.f32 %v2630_v40  ;;  %4706 = vmatpush3.bf16.msra.mxu1 %v4980_v43 }
 0x625   :  { %v5190_v42 = vpop.eup %5189  ;;  %v2617_v7 = vadd.f32 1.0, %v5188_v57  ;;  %5199 = vrcp.f32 %v2616_v45  ;;  %4707 = vmatprep.subr.bf16.mxu1 %v4981_v47  ;;  %v4992_v57 = vld [vmem:[#allocation8 + $0x90] sm:$0xff]   ;;  %v4554_v45 = vmul.f32 -1.442695, %v5691_v27  ;;  %v4996_v47 = vld [vmem:[#allocation8 + $0x98] sm:$0xff]  }
 0x626   :  { %v5192_v5 = vpop.eup %5191  ;;  %v2632_v11 = vadd.f32 1.0, %v5190_v42  ;;  %5201 = vrcp.f32 %v2631_v6  ;;  %4730 = vmatpush3.bf16.msra.mxu0 %v4992_v57  ;;  %v4994_v57 = vld [vmem:[#allocation8 + $0x28] sm:$0xff]  }
 0x627   :  { %v2633_v12 = vadd.f32 1.0, %v5192_v5  ;;  %5203 = vrcp.f32 %v2617_v7  ;;  %v4995_v5 = vld [vmem:[#allocation8 + $0xd8] sm:$0xff]  }
 0x628   :  { %5205 = vrcp.f32 %v2632_v11  ;;  %v4540_v11 = vmul.f32 -1.442695, %v5693_v10  ;;  %4708 = vmatpush3.bf16.msra.mxu1 %v4982_v48  ;;  %4731 = vmatprep.subr.bf16.mxu0 %v4995_v5  ;;  %v4993_v48 = vld [vmem:[#allocation8 + $0x68] sm:$0xff]  }
 0x629   :  { %5207 = vrcp.f32 %v2633_v12  ;;  %v4986_v12 = vld [vmem:[#allocation8 + $0x18] sm:$0xff]   ;;  %4709 = vmatprep.subr.bf16.mxu1 %v4985_v41 }
 0x62a   :  { %5209 = vpow2.f32 %v4537_v22  ;;  %v4990_v22 = vld [vmem:[#allocation8 + $0x20] sm:$0xff]   ;;  %4732 = vmatpush3.bf16.msra.mxu0 %v4996_v47 }
 0x62b   :  { %5211 = vpow2.f32 %v4538_v46 }
 0x62c   :  { %v5194_v50 = vpop.eup %5193  ;;  %5213 = vpow2.f32 %v4553_v31  ;;  %4710 = vmatpush3.bf16.msra.mxu1 %v4986_v12 }
 0x62d   :  { %v5196_v4 = vpop.eup %5195  ;;  %v2710_v42 = vmul.f32 %v5194_v50, %v5653_v55  ;;  %v4555_v55 = vmul.f32 -1.442695, %v5697_v30  ;;  %5215 = vpow2.f32 %v4539_v37  ;;  %4711 = vmatprep.subr.bf16.mxu1 %v4989_v17 }
 0x62e   :  { %v5198_v56 = vpop.eup %5197  ;;  %v2711_v7 = vmul.f32 %v5196_v4, %v5657_v58  ;;  %v4556_v58 = vmul.f32 -1.442695, %v5702_v53  ;;  %5217 = vpow2.f32 %v4554_v45 }
 0x62f   :  { %v5200_v20 = vpop.eup %5199  ;;  %v2726_v16 = vmul.f32 %v5198_v56, %v5659_v60  ;;  %5219 = vpow2.f32 %v4540_v11 }
 0x630   :  { %v5202_v8 = vpop.eup %5201  ;;  %v2712_v29 = vmul.f32 %v5200_v20, %v5661_v35  ;;  %5221 = vpow2.f32 %v4555_v55  ;;  %4712 = vmatpush3.bf16.msra.mxu1 %v4990_v22 }
 0x631   :  { %v5204_v40 = vpop.eup %5203  ;;  %v2727_v18 = vmul.f32 %v5202_v8, %v5663_v61  ;;  %5223 = vpow2.f32 %v4556_v58  ;;  %4713 = vmatprep.subr.bf16.mxu1 %v4993_v48 }
 0x632   :  { %v5206_v6 = vpop.eup %5205  ;;  %v2713_v43 = vmul.f32 %v5204_v40, %v5665_v63 }
 0x633   :  { %v5208_v14 = vpop.eup %5207  ;;  %v2728_v50 = vmul.f32 %v5206_v6, %v5667_v0 }
 0x634   :  { %v2729_v21 = vmul.f32 %v5208_v14, %v5671_v2  ;;  %v5210_v40 = vpop.eup %5209  ;;  %4714 = vmatpush3.bf16.msra.mxu1 %v4994_v57 }
 0x635   :  { %v2618_v6 = vadd.f32 1.0, %v5210_v40 }
 0x637   :  { %5225 = vrcp.f32 %v2618_v6 }
 0x63d   :  { %v2415_v63 = vpop.f32.mrb[28].mxu0 }
 0x63e   :  { %v5773_v56 = vmul.f32 %v2712_v29, %v2415_v63  ;;  %v2417_v46 = vpop.f32.mrb[29].mxu0 }
 0x63f   :  { %v5777_v2 = vmul.f32 %v2713_v43, %v2417_v46  ;;  %v2419_v31 = vpop.f32.mrb[30].mxu0 }
 0x640   :  { %v5779_v41 = vmul.f32 %v2728_v50, %v2419_v31  ;;  %v2421_v8 = vpop.f32.mrb[31].mxu0 }
 0x641   :  { %v5781_v37 = vmul.f32 %v2729_v21, %v2421_v8 }
 0x643   :  { %v2372_v19 = vpop.f32.mrb[24].mxu1 }
 0x644   :  { %v5766_v60 = vmul.f32 %v2710_v42, %v2372_v19  ;;  %v2374_v35 = vpop.f32.mrb[25].mxu1  ;;  %v5212_v42 = vpop.eup %5211 }
 0x645   :  { %v5769_v4 = vmul.f32 %v2711_v7, %v2374_v35  ;;  %v2376_v61 = vpop.f32.mrb[26].mxu1  ;;  %v5214_v45 = vpop.eup %5213  ;;  %v2619_v11 = vadd.f32 1.0, %v5212_v42 }
 0x646   :  { %v5771_v9 = vmul.f32 %v2726_v16, %v2376_v61  ;;  %v2378_v0 = vpop.f32.mrb[27].mxu1  ;;  %v5216_v5 = vpop.eup %5215  ;;  %v2634_v14 = vadd.f32 1.0, %v5214_v45 }
 0x647   :  { %v5775_v20 = vmul.f32 %v2727_v18, %v2378_v0  ;;  %v5218_v7 = vpop.eup %5217  ;;  %v2620_v29 = vadd.f32 1.0, %v5216_v5  ;;  %5227 = vrcp.f32 %v2619_v11 }
 0x648   :  { %v5220_v12 = vpop.eup %5219  ;;  %v2635_v17 = vadd.f32 1.0, %v5218_v7  ;;  %5229 = vrcp.f32 %v2634_v14 }
 0x649   :  { %v5222_v16 = vpop.eup %5221  ;;  %v2621_v18 = vadd.f32 1.0, %v5220_v12  ;;  %5231 = vrcp.f32 %v2620_v29 }
 0x64a   :  { %v5224_v55 = vpop.eup %5223  ;;  %v2636_v43 = vadd.f32 1.0, %v5222_v16  ;;  %5233 = vrcp.f32 %v2635_v17 }
 0x64b   :  { %v2637_v58 = vadd.f32 1.0, %v5224_v55  ;;  %5235 = vrcp.f32 %v2621_v18  ;;  %v5226_v19 = vpop.eup %5225 }
 0x64c   :  { %5237 = vrcp.f32 %v2636_v43  ;;  %v2714_v63 = vmul.f32 %v5226_v19, %v5669_v1  ;;  %v4997_v43 = vld [vmem:[#allocation8 + $0x70] sm:$0xff]   ;;  %v4999_v19 = vld [vmem:[#allocation8 + $0xe0] sm:$0xff]  }
 0x64d   :  { %5239 = vrcp.f32 %v2637_v58  ;;  %v4998_v58 = vld [vmem:[#allocation8 + $0x30] sm:$0xff]   ;;  %4715 = vmatprep.subr.bf16.mxu1 %v4997_v43  ;;  %4733 = vmatprep.subr.bf16.mxu0 %v4999_v19  ;;  %v5007_v43 = vld [vmem:[#allocation8 + $0x100] sm:$0xff]  }
 0x64e   :  { %4716 = vmatpush3.bf16.msra.mxu1 %v4998_v58  ;;  %v5009_v58 = vld [vmem:[#allocation8 + $0x148] sm:$0xff]  }
 0x651   :  { %v5228_v47 = vpop.eup %5227 }
 0x652   :  { %v5230_v50 = vpop.eup %5229  ;;  %v2715_v0 = vmul.f32 %v5228_v47, %v5673_v3  ;;  %v5000_v47 = vld [vmem:[#allocation8 + $0xa0] sm:$0xff]  }
 0x653   :  { %v5232_v35 = vpop.eup %5231  ;;  %v2730_v48 = vmul.f32 %v5230_v50, %v5685_v24  ;;  %4734 = vmatpush3.bf16.msra.mxu0 %v5000_v47  ;;  %v5011_v47 = vld [vmem:[#allocation8 + $0x108] sm:$0xff]  }
 0x654   :  { %v5234_v21 = vpop.eup %5233  ;;  %v2716_v31 = vmul.f32 %v5232_v35, %v5687_v25 }
 0x655   :  { %v5236_v61 = vpop.eup %5235  ;;  %v2731_v8 = vmul.f32 %v5234_v21, %v5691_v27  ;;  %v5001_v21 = vld [vmem:[#allocation8 + $0x78] sm:$0xff]  }
 0x656   :  { %v5238_v22 = vpop.eup %5237  ;;  %v2717_v57 = vmul.f32 %v5236_v61, %v5693_v10  ;;  %v5002_v61 = vld [vmem:[#allocation8 + $0x38] sm:$0xff]   ;;  %4717 = vmatprep.subr.bf16.mxu1 %v5001_v21 }
 0x657   :  { %v5240_v46 = vpop.eup %5239  ;;  %v2732_v42 = vmul.f32 %v5238_v22, %v5697_v30  ;;  %v5397_v22 = vmov 4   ;;  %4718 = vmatpush3.bf16.msra.mxu1 %v5002_v61 }
 0x658   :  { %v2733_v1 = vmul.f32 %v5240_v46, %v5702_v53  ;;  %v5006_v46 = vld [vmem:[#allocation8 + $0xf0] sm:$0xff]  }
 0x65d   :  { %v2501_v7 = vpop.f32.mrb[32].mxu0 }
 0x65e   :  { %v5797_v24 = vmul.f32 %v2716_v31, %v2501_v7  ;;  %v2503_v27 = vpop.f32.mrb[33].mxu0  ;;  %v5008_v31 = vld [vmem:[#allocation8 + $0xb0] sm:$0xff]  }
 0x65f   :  { %v5801_v10 = vmul.f32 %v2717_v57, %v2503_v27  ;;  %v2505_v30 = vpop.f32.mrb[34].mxu0  ;;  %v5012_v57 = vld [vmem:[#allocation8 + $0xb8] sm:$0xff]  }
 0x660   :  { %v5803_v14 = vmul.f32 %v2732_v42, %v2505_v30  ;;  %v2507_v16 = vpop.f32.mrb[35].mxu0  ;;  %v5014_v42 = vld [vmem:[#allocation8 + $0x1c0] sm:$0xff]  }
 0x661   :  { %v5805_v29 = vmul.f32 %v2733_v1, %v2507_v16  ;;  %v5402_v1 = vmov 3  }
 0x663   :  { %v2458_v40 = vpop.f32.mrb[28].mxu1 }
 0x664   :  { %v5790_v45 = vmul.f32 %v2714_v63, %v2458_v40  ;;  %v2460_v5 = vpop.f32.mrb[29].mxu1  ;;  %v5003_v63 = vld [vmem:[#allocation8 + $0xe8] sm:$0xff]   ;;  %v5400_v40 = vmov 7  }
 0x665   :  { %v5793_v6 = vmul.f32 %v2715_v0, %v2460_v5  ;;  %v2462_v3 = vpop.f32.mrb[30].mxu1  ;;  %v5004_v0 = vld [vmem:[#allocation8 + $0xa8] sm:$0xff]   ;;  %4735 = vmatprep.subr.bf16.mxu0 %v5003_v63  ;;  %v5401_v5 = vmov 2   ;;  %v5016_v63 = vld [vmem:[#allocation8 + $0x180] sm:$0xff]  }
 0x666   :  { %v5795_v11 = vmul.f32 %v2730_v48, %v2462_v3  ;;  %v2464_v25 = vpop.f32.mrb[31].mxu1  ;;  %4736 = vmatpush3.bf16.msra.mxu0 %v5004_v0  ;;  %v5398_v48 = vmov 1   ;;  %v5403_v3 = vmov 5   ;;  %v5018_v0 = vld [vmem:[#allocation8 + $0x1c8] sm:$0xff]  }
 0x667   :  { %v5799_v12 = vmul.f32 %v2731_v8, %v2464_v25  ;;  %4737 = vmatprep.subr.bf16.mxu0 %v5006_v46  ;;  %v5010_v8 = vld [vmem:[#allocation8 + $0xf8] sm:$0xff]  }
 0x668   :  { %v5019_v46 = vld [vmem:[#allocation8 + $0x118] sm:$0xff]  }
 0x66a   :  { %4738 = vmatpush3.bf16.msra.mxu0 %v5008_v31 }
 0x66b   :  { %4739 = vmatprep.subr.bf16.mxu0 %v5010_v8 }
 0x66e   :  { %4740 = vmatpush3.bf16.msra.mxu0 %v5012_v57  ;;  %v5022_v57 = vld [vmem:[#allocation8 + $0x120] sm:$0xff]  }
 0x66f   :  { %4769 = vmatprep.subr.bf16.mxu0 %v5014_v42  ;;  %v5025_v42 = vld [vmem:[#allocation8 + $0x168] sm:$0xff]  }
 0x679   :  { %v278_v53 = vpop.xlane.xlu0 %277 }
 0x67a   :  { %5241 = vrcp.f32 %v278_v53 }
 0x67d   :  { %v280_v55 = vpop.xlane.xlu1 %279 }
 0x67e   :  { %5243 = vrcp.f32 %v280_v55 }
 0x684   :  { %v5242_v17 = vpop.eup %5241 }
 0x685   :  { %v283_v18 = vmul.f32 %v5242_v17, %v5620_v39  ;;  %v5005_v39 = vld [vmem:[#allocation8 + $0x140] sm:$0xff]  }
 0x686   :  { %4747 = vmatprep.subr.bf16.mxu1 %v5005_v39 }
 0x687   :  { %2768 = vperm.xlu0 %4965, %v283_v18  }
 0x688   :  { %v5244_v50 = vpop.eup %5243 }
 0x689   :  { %v284_v35 = vmul.f32 %v5244_v50, %v5633_v23  ;;  %v5399_v23 = vmov 6  }
 0x68b   :  { %2773 = vperm.xlu1 %4966, %v284_v35   ;;  %4970 = vset.pattern.permute.xlu0 %v5397_v22 }
 0x68c   :  { %2829 = vperm.xlu0 %4970, %v284_v35  }
 0x68f   :  { %4967 = vset.pattern.permute.xlu1 %v5398_v48 }
 0x690   :  { %2783 = vperm.xlu1 %4967, %v283_v18   ;;  %4974 = vset.pattern.permute.xlu0 %v5399_v23 }
 0x691   :  { %2853 = vperm.xlu0 %4974, %v283_v18  }
 0x694   :  { %2787 = vperm.xlu1 %4967, %v284_v35  }
 0x695   :  { %4976 = vset.pattern.permute.xlu0 %v5400_v40 }
 0x696   :  { %2871 = vperm.xlu0 %4976, %v284_v35  }
 0x698   :  { %4968 = vset.pattern.permute.xlu1 %v5401_v5 }
 0x699   :  { %2801 = vperm.xlu1 %4968, %v284_v35  }
 0x69d   :  { %2797 = vperm.xlu1 %4968, %v283_v18  }
 0x6a1   :  { %4969 = vset.pattern.permute.xlu1 %v5402_v1 }
 0x6a2   :  { %2811 = vperm.xlu1 %4969, %v283_v18  }
 0x6a6   :  { %2815 = vperm.xlu1 %4969, %v284_v35  }
 0x6aa   :  { %4971 = vset.pattern.permute.xlu1 %v5397_v22  ;;  %v5017_v22 = vld [vmem:[#allocation8 + $0x158] sm:$0xff]  }
 0x6ab   :  { %2825 = vperm.xlu1 %4971, %v283_v18  }
 0x6af   :  { %4972 = vset.pattern.permute.xlu1 %v5403_v3 }
 0x6b0   :  { %2839 = vperm.xlu1 %4972, %v283_v18  }
 0x6b4   :  { %2843 = vperm.xlu1 %4972, %v284_v35  }
 0x6b8   :  { %4973 = vset.pattern.permute.xlu1 %v5399_v23 }
 0x6b9   :  { %2857 = vperm.xlu1 %4973, %v284_v35   ;;  %v5015_v35 = vld [vmem:[#allocation8 + $0x110] sm:$0xff]  }
 0x6bd   :  { %4975 = vset.pattern.permute.xlu1 %v5400_v40  ;;  %v5024_v40 = vld [vmem:[#allocation8 + $0x190] sm:$0xff]  }
 0x6be   :  { %2867 = vperm.xlu1 %4975, %v283_v18   ;;  %v5013_v18 = vld [vmem:[#allocation8 + $0x150] sm:$0xff]  }
 0x706   :  { %v2769_v7 = vpop.permute.xlu0 %2768 }
 0x707   :  { %v2776_v27 = vmul.f32 %v2769_v7, %v5700_v34  ;;  %v2777_v30 = vmul.f32 %v2769_v7, %v5705_v36  ;;  %v5031_v7 = vld [vmem:[#allocation8 + $0x1e0] sm:$0xff]  }
 0x70a   :  { %v2774_v25 = vpop.permute.xlu1 %2773 }
 0x70b   :  { %v2778_v16 = vmul.f32 %v2774_v25, %v5707_v38  ;;  %v2779_v53 = vmul.f32 %v2774_v25, %v5711_v59 }
 0x70d   :  { %v2780_v55 = vpack.c.bf16 %v2778_v16, %v2776_v27  ;;  %v2781_v17 = vpack.c.bf16 %v2779_v53, %v2777_v30  ;;  %v5030_v30 = vld [vmem:[#allocation8 + $0x130] sm:$0xff]  }
 0x70f   :  { %v2784_v19 = vpop.permute.xlu1 %2783  ;;  %3936 = vmatprep.mubr.bf16.mxu1 %v2781_v17  ;;  %v5032_v17 = vld [vmem:[#allocation8 + $0x1a0] sm:$0xff]  }
 0x710   :  { %3937 = vmatmul.mubr.bf16.vlgmr.msra.gmra.mrb[32].mxu1 %v2780_v55  ;;  %v2790_v34 = vmul.f32 %v2784_v19, %v5709_v54  ;;  %v2791_v36 = vmul.f32 %v2784_v19, %v5713_v33  ;;  %v5020_v54 = vld [vmem:[#allocation8 + $0x188] sm:$0xff]   ;;  %v5021_v33 = vld [vmem:[#allocation8 + $0x160] sm:$0xff]  }
 0x711   :  { %4748 = vmatpush3.bf16.msra.mxu1 %v5007_v43  ;;  %v2830_v43 = vpop.permute.xlu0 %2829  ;;  %v5035_v19 = vld [vmem:[#allocation8 + $0x1e8] sm:$0xff]  }
 0x712   :  { %4749 = vmatprep.subr.bf16.mxu1 %v5009_v58  ;;  %v5033_v58 = vld [vmem:[#allocation8 + $0x178] sm:$0xff]  }
 0x713   :  { %v2788_v50 = vpop.permute.xlu1 %2787 }
 0x714   :  { %v2792_v38 = vmul.f32 %v2788_v50, %v5715_v62  ;;  %v2793_v59 = vmul.f32 %v2788_v50, %v5717_v15  ;;  %v5023_v62 = vld [vmem:[#allocation8 + $0x1d0] sm:$0xff]   ;;  %v5036_v50 = vld [vmem:[#allocation8 + $0x1a8] sm:$0xff]  }
 0x715   :  { %4750 = vmatpush3.bf16.msra.mxu1 %v5011_v47 }
 0x716   :  { %v2794_v21 = vpack.c.bf16 %v2792_v38, %v2790_v34  ;;  %v2795_v61 = vpack.c.bf16 %v2793_v59, %v2791_v36  ;;  %4751 = vmatprep.subr.bf16.mxu1 %v5013_v18  ;;  %v5034_v18 = vld [vmem:[#allocation8 + $0x138] sm:$0xff]   ;;  %v2835_v34 = vmul.f32 %v2830_v43, %v5775_v20  ;;  %v5038_v59 = vld [vmem:[#allocation8 + $0x1f0] sm:$0xff]  }
 0x717   :  { %v5042_v20 = vld [vmem:[#allocation8 + $0x1f8] sm:$0xff]  }
 0x718   :  { %3977 = vmatprep.mubr.bf16.mxu0 %v2795_v61  ;;  %v2802_v39 = vpop.permute.xlu1 %2801  ;;  %v5040_v61 = vld [vmem:[#allocation8 + $0x1b0] sm:$0xff]  }
 0x719   :  { %4752 = vmatpush3.bf16.msra.mxu1 %v5015_v35  ;;  %3978 = vmatmul.mubr.bf16.vlgmr.msra.gmra.mrb[36].mxu0 %v2794_v21  ;;  %v5818_v48 = vmul.f32 %v2802_v39, %v5739_v51  ;;  %v2807_v23 = vmul.f32 %v2802_v39, %v5743_v32  ;;  %v5027_v51 = vld [vmem:[#allocation8 + $0x1d8] sm:$0xff]   ;;  %v5026_v32 = vld [vmem:[#allocation8 + $0x128] sm:$0xff]   ;;  %v5039_v21 = vld [vmem:[#allocation8 + $0x200] sm:$0xff]  }
 0x71a   :  { %4770 = vmatpush3.bf16.msra.mxu0 %v5016_v63  ;;  %4753 = vmatprep.subr.bf16.mxu1 %v5017_v22  ;;  %v5041_v63 = vld [vmem:[#allocation8 + $0x248] sm:$0xff]  }
 0x71b   :  { %4771 = vmatprep.subr.bf16.mxu0 %v5018_v0  ;;  %v5045_v0 = vld [vmem:[#allocation8 + $0x250] sm:$0xff]  }
 0x71c   :  { %v2798_v15 = vpop.permute.xlu1 %2797 }
 0x71d   :  { %v5822_v31 = vmul.f32 %v2798_v15, %v5734_v13  ;;  %v2805_v8 = vmul.f32 %v2798_v15, %v5737_v49  ;;  %4754 = vmatpush3.bf16.msra.mxu1 %v5019_v46  ;;  %v5028_v13 = vld [vmem:[#allocation8 + $0x198] sm:$0xff]   ;;  %v5029_v49 = vld [vmem:[#allocation8 + $0x170] sm:$0xff]   ;;  %v5046_v46 = vld [vmem:[#allocation8 + $0x2c0] sm:$0xff]  }
 0x71e   :  { %4772 = vmatpush3.bf16.msra.mxu0 %v5020_v54  ;;  %4755 = vmatprep.subr.bf16.mxu1 %v5021_v33  ;;  %v2854_v54 = vpop.permute.xlu0 %2853 }
 0x71f   :  { %v2808_v5 = vpack.c.bf16 %v5818_v48, %v5822_v31  ;;  %v2809_v1 = vpack.c.bf16 %v2807_v23, %v2805_v8  ;;  %4773 = vmatprep.subr.bf16.mxu0 %v5023_v62  ;;  %v5047_v23 = vld [vmem:[#allocation8 + $0x210] sm:$0xff]  }
 0x721   :  { %4756 = vmatpush3.bf16.msra.mxu1 %v5022_v57  ;;  %v2812_v3 = vpop.permute.xlu1 %2811  ;;  %4018 = vmatprep.mubr.bf16.mxu1 %v2809_v1  ;;  %v5048_v57 = vld [vmem:[#allocation8 + $0x280] sm:$0xff]   ;;  %v5050_v1 = vld [vmem:[#allocation8 + $0x218] sm:$0xff]  }
 0x722   :  { %4774 = vmatpush3.bf16.msra.mxu0 %v5024_v40  ;;  %4757 = vmatprep.subr.bf16.mxu1 %v5025_v42  ;;  %v5828_v25 = vmul.f32 %v2812_v3, %v5741_v52  ;;  %v2819_v16 = vmul.f32 %v2812_v3, %v5745_v44  ;;  %v5838_v44 = vmul.f32 %v2830_v43, %v5771_v9  ;;  %v5049_v40 = vld [vmem:[#allocation8 + $0x258] sm:$0xff]   ;;  %v5052_v3 = vld [vmem:[#allocation8 + $0x288] sm:$0xff]   ;;  %v5061_v43 = vld [vmem:[#allocation8 + $0x270] sm:$0xff]  }
 0x723   :  { %4775 = vmatprep.subr.bf16.mxu0 %v5027_v51  ;;  %v5858_v42 = vmul.f32 %v2854_v54, %v5790_v45  ;;  %v2872_v51 = vpop.permute.xlu0 %2871 }
 0x725   :  { %4758 = vmatpush3.bf16.msra.mxu1 %v5026_v32  ;;  %v2816_v27 = vpop.permute.xlu1 %2815  ;;  %v5053_v32 = vld [vmem:[#allocation8 + $0x260] sm:$0xff]  }
 0x726   :  { %4776 = vmatpush3.bf16.msra.mxu0 %v5028_v13  ;;  %v5832_v53 = vmul.f32 %v2816_v27, %v5747_v28  ;;  %v2821_v55 = vmul.f32 %v2816_v27, %v5749_v26  ;;  %4759 = vmatprep.subr.bf16.mxu1 %v5029_v49  ;;  %v5037_v26 = vld [vmem:[#allocation8 + $0x240] sm:$0xff]  }
 0x727   :  { %4777 = vmatprep.subr.bf16.mxu0 %v5031_v7  ;;  %v5054_v49 = vld [vmem:[#allocation8 + $0x220] sm:$0xff]   ;;  %v5874_v7 = vmul.f32 %v2872_v51, %v5805_v29  ;;  %v5060_v29 = vld [vmem:[#allocation8 + $0x298] sm:$0xff]  }
 0x728   :  { %v2822_v52 = vpack.c.bf16 %v5832_v53, %v5828_v25  ;;  %v2823_v47 = vpack.c.bf16 %v2821_v55, %v2819_v16  ;;  %v5057_v16 = vld [vmem:[#allocation8 + $0x268] sm:$0xff]   ;;  %v5059_v53 = vld [vmem:[#allocation8 + $0x2d8] sm:$0xff]  }
 0x729   :  { %4760 = vmatpush3.bf16.msra.mxu1 %v5030_v30  ;;  %v5056_v30 = vld [vmem:[#allocation8 + $0x290] sm:$0xff]  }
 0x72a   :  { %4778 = vmatpush3.bf16.msra.mxu0 %v5032_v17  ;;  %4059 = vmatprep.mubr.bf16.mxu0 %v2823_v47  ;;  %v2826_v28 = vpop.permute.xlu1 %2825  ;;  %v5058_v17 = vld [vmem:[#allocation8 + $0x228] sm:$0xff]   ;;  %v5066_v47 = vld [vmem:[#allocation8 + $0x238] sm:$0xff]  }
 0x72b   :  { %v5842_v36 = vmul.f32 %v2826_v28, %v5766_v60  ;;  %v2833_v38 = vmul.f32 %v2826_v28, %v5769_v4  ;;  %4761 = vmatprep.subr.bf16.mxu1 %v5033_v58  ;;  %4779 = vmatprep.subr.bf16.mxu0 %v5035_v19  ;;  %v5043_v60 = vld [vmem:[#allocation8 + $0x208] sm:$0xff]   ;;  %v5044_v4 = vld [vmem:[#allocation8 + $0x1b8] sm:$0xff]   ;;  %v5064_v58 = vld [vmem:[#allocation8 + $0x2a0] sm:$0xff]  }
 0x72c   :  { %v5065_v19 = vld [vmem:[#allocation8 + $0x278] sm:$0xff]   ;;  %v5069_v28 = vld [vmem:[#allocation8 + $0x340] sm:$0xff]  }
 0x72d   :  { %v2836_v35 = vpack.c.bf16 %v5838_v44, %v5842_v36  ;;  %v2837_v9 = vpack.c.bf16 %v2835_v34, %v2833_v38  ;;  %4762 = vmatpush3.bf16.msra.mxu1 %v5034_v18  ;;  %v5068_v18 = vld [vmem:[#allocation8 + $0x2a8] sm:$0xff]   ;;  %v5072_v34 = vld [vmem:[#allocation8 + $0x2b0] sm:$0xff]   ;;  %v5082_v44 = vld [vmem:[#allocation8 + $0x318] sm:$0xff]  }
 0x72e   :  { %4780 = vmatpush3.bf16.msra.mxu0 %v5036_v50  ;;  %4791 = vmatprep.subr.bf16.mxu1 %v5037_v26  ;;  %v5070_v50 = vld [vmem:[#allocation8 + $0x2f0] sm:$0xff]   ;;  %v5071_v26 = vld [vmem:[#allocation8 + $0x300] sm:$0xff]   ;;  %v5073_v38 = vld [vmem:[#allocation8 + $0x348] sm:$0xff]  }
 0x72f   :  { %v2840_v22 = vpop.permute.xlu1 %2839  ;;  %4781 = vmatprep.subr.bf16.mxu0 %v5038_v59  ;;  %v5074_v59 = vld [vmem:[#allocation8 + $0x2f8] sm:$0xff]   ;;  %v5084_v36 = vld [vmem:[#allocation8 + $0x388] sm:$0xff]  }
 0x730   :  { %4019 = vmatmul.mubr.bf16.vlgmr.msra.gmra.mrb[36].mxu1 %v2808_v5  ;;  %v5848_v33 = vmul.f32 %v2840_v22, %v5773_v56  ;;  %v2847_v62 = vmul.f32 %v2840_v22, %v5777_v2  ;;  %v5051_v56 = vld [vmem:[#allocation8 + $0x2c8] sm:$0xff]   ;;  %v5078_v22 = vld [vmem:[#allocation8 + $0x310] sm:$0xff]  }
 0x731   :  { %4792 = vmatpush3.bf16.msra.mxu1 %v5039_v21  ;;  %4100 = vmatprep.mubr.bf16.mxu1 %v2837_v9  ;;  %v5075_v9 = vld [vmem:[#allocation8 + $0x308] sm:$0xff]   ;;  %v5076_v21 = vld [vmem:[#allocation8 + $0x2b8] sm:$0xff]  }
 0x732   :  { %4782 = vmatpush3.bf16.msra.mxu0 %v5040_v61  ;;  %4793 = vmatprep.subr.bf16.mxu1 %v5041_v63  ;;  %v5077_v61 = vld [vmem:[#allocation8 + $0x350] sm:$0xff]   ;;  %v5079_v63 = vld [vmem:[#allocation8 + $0x3c0] sm:$0xff]  }
 0x733   :  { %v2844_v39 = vpop.permute.xlu1 %2843  ;;  %4783 = vmatprep.subr.bf16.mxu0 %v5042_v20  ;;  %v5080_v20 = vld [vmem:[#allocation8 + $0x380] sm:$0xff]  }
 0x734   :  { %v5852_v15 = vmul.f32 %v2844_v39, %v5779_v41  ;;  %v2849_v48 = vmul.f32 %v2844_v39, %v5781_v37  ;;  %v5861_v41 = vmul.f32 %v2854_v54, %v5793_v6  ;;  %v5055_v6 = vld [vmem:[#allocation8 + $0x2d0] sm:$0xff]   ;;  %v5086_v39 = vld [vmem:[#allocation8 + $0x320] sm:$0xff]   ;;  %v5089_v54 = vld [vmem:[#allocation8 + $0x368] sm:$0xff]  }
 0x735   :  { %4794 = vmatpush3.bf16.msra.mxu1 %v5043_v60  ;;  %v5081_v60 = vld [vmem:[#allocation8 + $0x358] sm:$0xff]  }
 0x736   :  { %v2850_v31 = vpack.c.bf16 %v5852_v15, %v5848_v33  ;;  %v2851_v8 = vpack.c.bf16 %v2849_v48, %v2847_v62  ;;  %4784 = vmatpush3.bf16.msra.mxu0 %v5044_v4  ;;  %4795 = vmatprep.subr.bf16.mxu1 %v5045_v0  ;;  %v5083_v4 = vld [vmem:[#allocation8 + $0x3c8] sm:$0xff]   ;;  %v5087_v0 = vld [vmem:[#allocation8 + $0x3d0] sm:$0xff]   ;;  %v5091_v62 = vld [vmem:[#allocation8 + $0x3d8] sm:$0xff]  }
 0x737   :  { %4813 = vmatprep.subr.bf16.mxu0 %v5046_v46  ;;  %v5088_v46 = vld [vmem:[#allocation8 + $0x390] sm:$0xff]   ;;  %v5090_v33 = vld [vmem:[#allocation8 + $0x328] sm:$0xff]   ;;  %v5092_v15 = vld [vmem:[#allocation8 + $0x398] sm:$0xff]  }
 0x738   :  { %v2858_v2 = vpop.permute.xlu1 %2857  ;;  %v5093_v48 = vld [vmem:[#allocation8 + $0x370] sm:$0xff]  }
 0x739   :  { %4060 = vmatmul.mubr.bf16.vlgmr.msra.gmra.mrb[40].mxu0 %v2822_v52  ;;  %v5864_v37 = vmul.f32 %v2858_v2, %v5795_v11  ;;  %v2863_v5 = vmul.f32 %v2858_v2, %v5799_v12  ;;  %4796 = vmatpush3.bf16.msra.mxu1 %v5047_v23  ;;  %v5871_v11 = vmul.f32 %v2872_v51, %v5803_v14  ;;  %v5067_v52 = vld [vmem:[#allocation8 + $0x2e8] sm:$0xff]   ;;  %v5095_v23 = vld [vmem:[#allocation8 + $0x3e0] sm:$0xff]   ;;  %v5104_v51 = vld [vmem:[#allocation8 + $0x3b8] sm:$0xff]  }
 0x73a   :  { %4814 = vmatpush3.bf16.msra.mxu0 %v5048_v57  ;;  %4141 = vmatprep.mubr.bf16.mxu0 %v2851_v8  ;;  %v5096_v8 = vld [vmem:[#allocation8 + $0x3a0] sm:$0xff]   ;;  %v5097_v57 = vld [vmem:[#allocation8 + $0x378] sm:$0xff]   ;;  %v5100_v2 = vld [vmem:[#allocation8 + $0x3a8] sm:$0xff]  }
 0x73b   :  { %v2864_v45 = vpack.c.bf16 %v5864_v37, %v5858_v42  ;;  %v2865_v13 = vpack.c.bf16 %v2863_v5, %v5861_v41  ;;  %4797 = vmatprep.subr.bf16.mxu1 %v5049_v40  ;;  %4815 = vmatprep.subr.bf16.mxu0 %v5051_v56  ;;  %v5099_v40 = vld [vmem:[#allocation8 + $0x3e8] sm:$0xff]   ;;  %v5098_v56 = vld [vmem:[#allocation8 + $0x338] sm:$0xff]   ;;  %v5101_v41 = vld [vmem:[#allocation8 + $0x3f0] sm:$0xff]  }
 0x73c   :  { %v5102_v5 = vld [vmem:[#allocation8 + $0x3b0] sm:$0xff]  }
 0x73d   :  { %4798 = vmatpush3.bf16.msra.mxu1 %v5050_v1  ;;  %v2868_v12 = vpop.permute.xlu1 %2867  ;;  %v5103_v1 = vld [vmem:[#allocation8 + $0x3f8] sm:$0xff]  }
 0x73e   :  { %4816 = vmatpush3.bf16.msra.mxu0 %v5052_v3  ;;  %v5877_v25 = vmul.f32 %v2868_v12, %v5797_v24  ;;  %v2875_v27 = vmul.f32 %v2868_v12, %v5801_v10  ;;  %4799 = vmatprep.subr.bf16.mxu1 %v5053_v32  ;;  %v5063_v24 = vld [vmem:[#allocation8 + $0x2e0] sm:$0xff]   ;;  %v5062_v10 = vld [vmem:[#allocation8 + $0x230] sm:$0xff]  }
 0x73f   :  { %4817 = vmatprep.subr.bf16.mxu0 %v5055_v6 }
 0x740   :  { %v2878_v14 = vpack.c.bf16 %v5871_v11, %v5877_v25  ;;  %v2879_v55 = vpack.c.bf16 %v5874_v7, %v2875_v27 }
 0x741   :  { %4800 = vmatpush3.bf16.msra.mxu1 %v5054_v49 }
 0x742   :  { %4818 = vmatpush3.bf16.msra.mxu0 %v5056_v30  ;;  %4801 = vmatprep.subr.bf16.mxu1 %v5057_v16 }
 0x743   :  { %4819 = vmatprep.subr.bf16.mxu0 %v5059_v53 }
 0x745   :  { %4802 = vmatpush3.bf16.msra.mxu1 %v5058_v17 }
 0x746   :  { %4820 = vmatpush3.bf16.msra.mxu0 %v5060_v29  ;;  %4803 = vmatprep.subr.bf16.mxu1 %v5061_v43 }
 0x747   :  { %4821 = vmatprep.subr.bf16.mxu0 %v5063_v24 }
 0x749   :  { %4804 = vmatpush3.bf16.msra.mxu1 %v5062_v10 }
 0x74a   :  { %4822 = vmatpush3.bf16.msra.mxu0 %v5064_v58  ;;  %4805 = vmatprep.subr.bf16.mxu1 %v5065_v19 }
 0x74b   :  { %4823 = vmatprep.subr.bf16.mxu0 %v5067_v52 }
 0x74d   :  { %4806 = vmatpush3.bf16.msra.mxu1 %v5066_v47 }
 0x74e   :  { %4824 = vmatpush3.bf16.msra.mxu0 %v5068_v18  ;;  %4835 = vmatprep.subr.bf16.mxu1 %v5069_v28 }
 0x74f   :  { %4825 = vmatprep.subr.bf16.mxu0 %v5070_v50 }
 0x750   :  { %4101 = vmatmul.mubr.bf16.vlgmr.msra.gmra.mrb[40].mxu1 %v2836_v35  ;;  %v5085_v35 = vld [vmem:[#allocation8 + $0x360] sm:$0xff]  }
 0x751   :  { %4836 = vmatpush3.bf16.msra.mxu1 %v5071_v26  ;;  %4182 = vmatprep.mubr.bf16.mxu1 %v2865_v13 }
 0x752   :  { %4826 = vmatpush3.bf16.msra.mxu0 %v5072_v34  ;;  %4837 = vmatprep.subr.bf16.mxu1 %v5073_v38 }
 0x753   :  { %4827 = vmatprep.subr.bf16.mxu0 %v5074_v59 }
 0x755   :  { %4838 = vmatpush3.bf16.msra.mxu1 %v5075_v9 }
 0x756   :  { %4828 = vmatpush3.bf16.msra.mxu0 %v5076_v21  ;;  %4839 = vmatprep.subr.bf16.mxu1 %v5077_v61 }
 0x757   :  { %4857 = vmatprep.subr.bf16.mxu0 %v5079_v63 }
 0x759   :  { %4142 = vmatmul.mubr.bf16.vlgmr.msra.gmra.mrb[44].mxu0 %v2850_v31  ;;  %4840 = vmatpush3.bf16.msra.mxu1 %v5078_v22  ;;  %v5094_v31 = vld [vmem:[#allocation8 + $0x330] sm:$0xff]  }
 0x75a   :  { %4858 = vmatpush3.bf16.msra.mxu0 %v5080_v20  ;;  %4223 = vmatprep.mubr.bf16.mxu0 %v2879_v55 }
 0x75b   :  { %4841 = vmatprep.subr.bf16.mxu1 %v5081_v60  ;;  %4859 = vmatprep.subr.bf16.mxu0 %v5083_v4 }
 0x75d   :  { %4842 = vmatpush3.bf16.msra.mxu1 %v5082_v44 }
 0x75e   :  { %4860 = vmatpush3.bf16.msra.mxu0 %v5084_v36  ;;  %4843 = vmatprep.subr.bf16.mxu1 %v5085_v35 }
 0x75f   :  { %4861 = vmatprep.subr.bf16.mxu0 %v5087_v0 }
 0x761   :  { %4844 = vmatpush3.bf16.msra.mxu1 %v5086_v39 }
 0x762   :  { %4862 = vmatpush3.bf16.msra.mxu0 %v5088_v46  ;;  %4845 = vmatprep.subr.bf16.mxu1 %v5089_v54 }
 0x763   :  { %4863 = vmatprep.subr.bf16.mxu0 %v5091_v62 }
 0x765   :  { %4846 = vmatpush3.bf16.msra.mxu1 %v5090_v33 }
 0x766   :  { %4864 = vmatpush3.bf16.msra.mxu0 %v5092_v15  ;;  %4847 = vmatprep.subr.bf16.mxu1 %v5093_v48 }
 0x767   :  { %4865 = vmatprep.subr.bf16.mxu0 %v5095_v23 }
 0x769   :  { %4848 = vmatpush3.bf16.msra.mxu1 %v5094_v31 }
 0x76a   :  { %4866 = vmatpush3.bf16.msra.mxu0 %v5096_v8  ;;  %4849 = vmatprep.subr.bf16.mxu1 %v5097_v57 }
 0x76b   :  { %4867 = vmatprep.subr.bf16.mxu0 %v5099_v40 }
 0x76d   :  { %4850 = vmatpush3.bf16.msra.mxu1 %v5098_v56 }
 0x76e   :  { %4868 = vmatpush3.bf16.msra.mxu0 %v5100_v2 }
 0x76f   :  { %4869 = vmatprep.subr.bf16.mxu0 %v5101_v41 }
 0x770   :  { %4183 = vmatmul.mubr.bf16.vlgmr.msra.gmra.mrb[44].mxu1 %v2864_v45 }
 0x772   :  { %4870 = vmatpush3.bf16.msra.mxu0 %v5102_v5 }
 0x773   :  { %4871 = vmatprep.subr.bf16.mxu0 %v5103_v1 }
 0x776   :  { %4872 = vmatpush3.bf16.msra.mxu0 %v5104_v51 }
 0x779   :  { %4224 = vmatmul.mubr.bf16.vlgmr.msra.gmra.mrb[48].mxu0 %v2878_v14 }
 0x77a   :  { %5344 = shalt.err (!%p5341_p8)
}
 0x77b   :  { %s5345_s24 = scalar_lea.hbm %s5930_s5, 256 }
 0x77c   :  { %p5346_p9 = scmp.ne.s32.totalorder %s5930_s5, %s5345_s24  ;;  %p5349_p10 = scmp.lt.u32.totalorder %s5345_s24, %s5930_s5 }
 0x77e   :  { %p5351_p11 = pnand %p5349_p10, %p5346_p9 }
 0x780   :  { %5354 = shalt.err (!%p5351_p11)
}
 0x781   :  { %4257 = dma.vmem_to_hbm [thread:$0]  %s4252_s19, 256, %s5930_s5, [#allocation12], %s5389_s30, %s5389_s30, %s5390_s6  }
 0x782   :  { %s5405_s5 = smov [#allocation10]  }
 0x783   :  { %s4239_s21 = sshll.u32 %s5405_s5, 4  ;;  %s4240_s21 = int_to_ptr.vmem [resolvable:$true] %s4239_s21 }
 0x784   :  { %s5355_s7 = scalar_lea.vmem %s4240_s21, 256  ;;  %p5360_p13 = scmp.lt.s32.totalorder %s4240_s21, %s4240_s21 }
 0x785   :  { %p5356_p12 = scmp.ne.s32.totalorder %s4240_s21, %s5355_s7  ;;  %p5361_p0 = scmp.lt.s32.totalorder %s5355_s7, %s5355_s7 }
 0x787   :  { %p5362_p1 = por %p5361_p0, %p5360_p13 }
 0x789   :  { %p5363_p2 = pnand %p5362_p1, %p5356_p12 }
 0x7e3   :  { %v4719_v42 = vpop.f32.mrb[32].mxu1 }
 0x7e4   :  { %v4720_v37 = vpop.f32.mrb[33].mxu1 }
 0x7e5   :  { %v4721_v3 = vadd.f32 %v4720_v37, %v4719_v42  ;;  %v4722_v32 = vpop.f32.mrb[34].mxu1 }
 0x7e6   :  { %v4723_v45 = vpop.f32.mrb[35].mxu1 }
 0x7e7   :  { %v4724_v13 = vadd.f32 %v4723_v45, %v4722_v32 }
 0x7ec   :  { %v4741_v6 = vpop.f32.mrb[36].mxu0 }
 0x7ed   :  { %v4742_v11 = vpop.f32.mrb[37].mxu0 }
 0x7ee   :  { %v4743_v12 = vadd.f32 %v4742_v11, %v4741_v6  ;;  %v4744_v49 = vpop.f32.mrb[38].mxu0 }
 0x7ef   :  { %v4745_v7 = vpop.f32.mrb[39].mxu0 }
 0x7f0   :  { %v3980_v25 = vadd.f32 %v4743_v12, %v4721_v3  ;;  %v4746_v27 = vadd.f32 %v4745_v7, %v4744_v49 }
 0x7f2   :  { %v3983_v30 = vadd.f32 %v4746_v27, %v4724_v13 }
 0x803   :  { %v4763_v16 = vpop.f32.mrb[36].mxu1 }
 0x804   :  { %v4764_v53 = vpop.f32.mrb[37].mxu1 }
 0x805   :  { %v4765_v14 = vadd.f32 %v4764_v53, %v4763_v16  ;;  %v4766_v55 = vpop.f32.mrb[38].mxu1 }
 0x806   :  { %v4767_v17 = vpop.f32.mrb[39].mxu1 }
 0x807   :  { %v4021_v29 = vadd.f32 %v4765_v14, %v3980_v25  ;;  %v4768_v43 = vadd.f32 %v4767_v17, %v4766_v55 }
 0x809   :  { %v4024_v24 = vadd.f32 %v4768_v43, %v3983_v30 }
 0x80c   :  { %v4785_v10 = vpop.f32.mrb[40].mxu0 }
 0x80d   :  { %v4786_v58 = vpop.f32.mrb[41].mxu0 }
 0x80e   :  { %v4787_v19 = vadd.f32 %v4786_v58, %v4785_v10  ;;  %v4788_v52 = vpop.f32.mrb[42].mxu0 }
 0x80f   :  { %v4789_v47 = vpop.f32.mrb[43].mxu0 }
 0x810   :  { %v4062_v18 = vadd.f32 %v4787_v19, %v4021_v29  ;;  %v4790_v28 = vadd.f32 %v4789_v47, %v4788_v52 }
 0x812   :  { %v4065_v50 = vadd.f32 %v4790_v28, %v4024_v24 }
 0x823   :  { %v4807_v26 = vpop.f32.mrb[40].mxu1 }
 0x824   :  { %v4808_v34 = vpop.f32.mrb[41].mxu1 }
 0x825   :  { %v4809_v38 = vadd.f32 %v4808_v34, %v4807_v26  ;;  %v4810_v59 = vpop.f32.mrb[42].mxu1 }
 0x826   :  { %v4811_v9 = vpop.f32.mrb[43].mxu1 }
 0x827   :  { %v4103_v21 = vadd.f32 %v4809_v38, %v4062_v18  ;;  %v4812_v61 = vadd.f32 %v4811_v9, %v4810_v59 }
 0x829   :  { %v4106_v63 = vadd.f32 %v4812_v61, %v4065_v50 }
 0x82c   :  { %v4829_v22 = vpop.f32.mrb[44].mxu0 }
 0x82d   :  { %v4830_v20 = vpop.f32.mrb[45].mxu0 }
 0x82e   :  { %v4831_v60 = vadd.f32 %v4830_v20, %v4829_v22  ;;  %v4832_v4 = vpop.f32.mrb[46].mxu0 }
 0x82f   :  { %v4833_v44 = vpop.f32.mrb[47].mxu0 }
 0x830   :  { %v4144_v36 = vadd.f32 %v4831_v60, %v4103_v21  ;;  %v4834_v35 = vadd.f32 %v4833_v44, %v4832_v4 }
 0x832   :  { %v4147_v0 = vadd.f32 %v4834_v35, %v4106_v63 }
 0x843   :  { %v4851_v39 = vpop.f32.mrb[44].mxu1 }
 0x844   :  { %v4852_v46 = vpop.f32.mrb[45].mxu1 }
 0x845   :  { %v4853_v54 = vadd.f32 %v4852_v46, %v4851_v39  ;;  %v4854_v62 = vpop.f32.mrb[46].mxu1 }
 0x846   :  { %v4855_v33 = vpop.f32.mrb[47].mxu1 }
 0x847   :  { %v4185_v15 = vadd.f32 %v4853_v54, %v4144_v36  ;;  %v4856_v48 = vadd.f32 %v4855_v33, %v4854_v62 }
 0x849   :  { %v4188_v23 = vadd.f32 %v4856_v48, %v4147_v0 }
 0x84c   :  { %v4873_v31 = vpop.f32.mrb[48].mxu0 }
 0x84d   :  { %v4874_v8 = vpop.f32.mrb[49].mxu0 }
 0x84e   :  { %v4875_v57 = vadd.f32 %v4874_v8, %v4873_v31  ;;  %v4876_v40 = vpop.f32.mrb[50].mxu0 }
 0x84f   :  { %v4877_v56 = vpop.f32.mrb[51].mxu0 }
 0x850   :  { %v4226_v2 = vadd.f32 %v4875_v57, %v4185_v15  ;;  %v4878_v41 = vadd.f32 %v4877_v56, %v4876_v40 }
 0x852   :  { %4232 = vst [vmem:[#allocation10] sm:$0xff] %v4226_v2  ;;  %v4229_v5 = vadd.f32 %v4878_v41, %v4188_v23 }
 0x854   :  { %4233 = vst [vmem:[#allocation10 + $0x8] sm:$0xff] %v4229_v5 }
 0x855   :  { %5366 = shalt.err (!%p5363_p2)
}
 0x856   :  { %s5367_s10 = scalar_lea.hbm %s5929_s4, 256 }
 0x857   :  { %p5368_p3 = scmp.ne.s32.totalorder %s5929_s4, %s5367_s10  ;;  %p5371_p4 = scmp.lt.u32.totalorder %s5367_s10, %s5929_s4 }
 0x859   :  { %p5373_p5 = pnand %p5371_p4, %p5368_p3 }
 0x85b   :  { %5376 = shalt.err (!%p5373_p5)
}
 0x85c   :  { %4245 = dma.vmem_to_hbm [thread:$0]  %s4240_s21, 256, %s5929_s4, [#allocation4], %s5389_s30, %s5389_s30, %s5390_s6  }
 0x85d   :  { %5383 = dma.done.wait [#allocation4], 256  }
 0x85e   :  { %5384 = vsyncadd [#allocation4], 4294967040 }
 0x85f   :  { %5385 = dma.done.wait [#allocation12], 256  }
 0x860   :  { %5386 = vsyncadd [#allocation12], 4294967040 }
 0x861   :  { %4264 = vsyncpa [#allocation3], 1 }
 0x862   :  { %4265 = vsyncpa [#allocation6], 1 }
 0x863   :  { %4266 = vsyncpa [#allocation9], 1 }
 0x864   :  { %4267 = vsyncpa [#allocation4], 1 }
 0x865   :  { %4268 = vsyncpa [#allocation12], 1 }

</bundles_post_ra>
